<compile_context>
chip_gen: v7x
topology: tpu7x:2x2x1
jax: 0.10.0
libtpu: 0.0.40
codegen_flags: <defaults>
</compile_context>

<pallas_src>
import functools

import jax
import jax.numpy as jnp
from jax.experimental import pallas as pl
from jax.experimental.pallas import tpu as pltpu

# ----- small Qwen2-like config -----
BATCH = 2
SEQ = 8
HIDDEN = 32
N_HEADS = 4
N_KV_HEADS = 2
HEAD_DIM = HIDDEN // N_HEADS              # 8
Q_DIM = N_HEADS * HEAD_DIM                # 32
KV_DIM = N_KV_HEADS * HEAD_DIM            # 16
QKV_DIM = Q_DIM + 2 * KV_DIM              # 64
INTERMEDIATE = 64
RMS_EPS = 1e-6
ROPE_THETA = 10000.0

VMEM = pl.BlockSpec(memory_space=pltpu.MemorySpace.VMEM)


def _rotate_half(x):
    """HF rotate_half: [-x2, x1] on the last (head_dim) axis — VPU/lane work only."""
    half = x.shape[-1] // 2
    return jnp.concatenate([-x[..., half:], x[..., :half]], axis=-1)


# ---------------- fused decoder-layer kernel ----------------

def _qwen2_block_kernel(
    x_ref,        # (B*S, H)          f32  residual stream
    ln1_ref,      # (1, H)            f32
    wqkv_ref,     # (H, QKV_DIM)      bf16 fused [wq | wk | wv]
    bqkv_ref,     # (1, QKV_DIM)      f32
    wo_ref,       # (Q_DIM, H)        bf16 (o_proj has no bias in Qwen2)
    ln2_ref,      # (1, H)            f32
    wgu_ref,      # (H, 2*I)          bf16 fused [w_gate | w_up]
    wd_ref,       # (I, H)            bf16
    cos_ref,      # (B*S, D)          f32  one copy, broadcast over heads
    sin_ref,      # (B*S, D)          f32
    out_ref,      # (B*S, H)          f32
    pk_ref,       # (B, S, KV_DIM)    f32  lane-dense; transposed in wrapper
    pv_ref,       # (B, S, KV_DIM)    f32
    *, eps, scale,
):
    B, S, D = BATCH, SEQ, HEAD_DIM
    rep = N_HEADS // N_KV_HEADS

    x = x_ref[...]                                            # f32

    # ---- input RMSNorm (f32) ----
    var = jnp.mean(x * x, axis=-1, keepdims=True)
    xn = (x * jax.lax.rsqrt(var + eps) * ln1_ref[...]).astype(jnp.bfloat16)

    # ---- fused QKV projection: bf16 operands, f32 accumulation ----
    qkv = jnp.dot(xn, wqkv_ref[...],
                  preferred_element_type=jnp.float32) + bqkv_ref[...]

    q = qkv[:, :Q_DIM].reshape(B, S, N_HEADS, D)
    k = qkv[:, Q_DIM:Q_DIM + KV_DIM].reshape(B, S, N_KV_HEADS, D)
    v2 = qkv[:, Q_DIM + KV_DIM:]                              # (B*S, KV_DIM)
    v = v2.reshape(B, S, N_KV_HEADS, D)

    # ---- RoPE: one (B*S, D) cos/sin copy broadcast across heads ----
    cos = cos_ref[...].reshape(B, S, 1, D)
    sin = sin_ref[...].reshape(B, S, 1, D)
    # TODO(synk): with head_dim a multiple of 128, replace _rotate_half with
    # pltpu.roll(x, D//2, axis=-1) + a broadcasted_iota sign mask (XLU slot).
    q_ro = q * cos + _rotate_half(q) * sin
    k_ro = k * cos + _rotate_half(k) * sin

    # ---- present K/V cache: single lane-dense stores (post-RoPE K) ----
    pk_ref[...] = k_ro.reshape(B, S, KV_DIM)
    pv_ref[...] = v2.reshape(B, S, KV_DIM)

    # ---- causal additive mask generated in-kernel (no HBM mask DMA) ----
    row = jax.lax.broadcasted_iota(jnp.int32, (S, S), 0)
    col = jax.lax.broadcasted_iota(jnp.int32, (S, S), 1)
    mask = jnp.where(row >= col, 0.0, -1e9).astype(jnp.float32)

    # ---- GQA attention: kv head g serves q heads [g*rep, (g+1)*rep) ----
    q_bf = q_ro.astype(jnp.bfloat16)
    k_bf = k_ro.astype(jnp.bfloat16)
    v_bf = v.astype(jnp.bfloat16)

    # TODO(synk): at production head counts, move (batch, head) onto grid axes
    # (megacore-parallel on v7x) instead of this small unrolled loop.
    outs = []
    for h in range(N_HEADS):
        g = h // rep
        qh = q_bf[:, :, h, :]                                 # (B, S, D)
        kh = k_bf[:, :, g, :]                                 # (B, S, D)
        vh = v_bf[:, :, g, :]                                 # (B, S, D)
        # dot_general contracting the last dims: no materialised kh.T
        s = jnp.einsum('bqd,bkd->bqk', qh, kh,
                       preferred_element_type=jnp.float32) * scale + mask
        m = jnp.max(s, axis=-1, keepdims=True)
        p = jnp.exp(s - m)
        l = jnp.sum(p, axis=-1, keepdims=True)
        o = jnp.einsum('bqk,bkd->bqd', p.astype(jnp.bfloat16), vh,
                       preferred_element_type=jnp.float32)
        # approx reciprocal on the EUP slot (use exact divide for parity tests)
        outs.append(o * pl.reciprocal(l, approx=True))

    attn = jnp.concatenate(outs, axis=-1).reshape(B * S, Q_DIM).astype(jnp.bfloat16)

    # ---- o_proj (no bias) + residual ----
    h1 = x + jnp.dot(attn, wo_ref[...], preferred_element_type=jnp.float32)

    # ---- post-attention RMSNorm + fused SwiGLU MLP + residual (f32 math) ----
    var2 = jnp.mean(h1 * h1, axis=-1, keepdims=True)
    xn2 = (h1 * jax.lax.rsqrt(var2 + eps) * ln2_ref[...]).astype(jnp.bfloat16)
    gu = jnp.dot(xn2, wgu_ref[...], preferred_element_type=jnp.float32)   # (B*S, 2I)
    gate = gu[:, :INTERMEDIATE]
    up = gu[:, INTERMEDIATE:]
    act = (gate * jax.nn.sigmoid(gate) * up).astype(jnp.bfloat16)
    out_ref[...] = h1 + jnp.dot(act, wd_ref[...],
                                preferred_element_type=jnp.float32)


# ---------------- wrapper / glue ----------------

def rope_cos_sin(position_ids, dim, theta):
    # TODO(synk): cos/sin table stays in plain JAX (tiny transcendental op).
    inv_freq = 1.0 / (theta ** (jnp.arange(0, dim, 2, dtype=jnp.float32) / dim))
    freqs = position_ids.astype(jnp.float32)[..., None] * inv_freq[None, None, :]
    emb = jnp.concatenate([freqs, freqs], axis=-1)            # (B, S, D)
    return jnp.cos(emb), jnp.sin(emb)


def block_forward(params, hidden_states, position_ids, attention_mask):
    B, S, H = hidden_states.shape
    BS = B * S
    x = hidden_states.astype(jnp.float32).reshape(BS, H)

    cos, sin = rope_cos_sin(position_ids, HEAD_DIM, ROPE_THETA)     # (B, S, D)
    cos2 = cos.reshape(BS, HEAD_DIM)                                # no per-head tiling
    sin2 = sin.reshape(BS, HEAD_DIM)

    # TODO(synk): the causal mask is generated in-kernel via broadcasted_iota;
    # arbitrary (e.g. padded) attention_mask inputs would need to be passed in.
    del attention_mask

    kernel = functools.partial(_qwen2_block_kernel, eps=RMS_EPS,
                               scale=1.0 / (HEAD_DIM ** 0.5))

    out, pk, pv = pl.pallas_call(
        kernel,
        out_shape=(
            jax.ShapeDtypeStruct((BS, H), jnp.float32),
            jax.ShapeDtypeStruct((B, S, KV_DIM), jnp.float32),
            jax.ShapeDtypeStruct((B, S, KV_DIM), jnp.float32),
        ),
        in_specs=[VMEM] * 10,
        out_specs=(VMEM, VMEM, VMEM),
    )(x, params["ln1_w"], params["wqkv"], params["bqkv"], params["wo"],
      params["ln2_w"], params["wgu"], params["wd"], cos2, sin2)

    hidden_out = out.reshape(B, S, H)
    present_k = pk.reshape(B, S, N_KV_HEADS, HEAD_DIM).transpose(0, 2, 1, 3)
    present_v = pv.reshape(B, S, N_KV_HEADS, HEAD_DIM).transpose(0, 2, 1, 3)
    return hidden_out, present_k, present_v


# ---------------- deterministic parameter init ----------------

def init_params(key):
    ks = jax.random.split(key, 10)

    def w(k, shape, scale=0.02):
        return jax.random.normal(k, shape, jnp.float32) * scale

    wq = w(ks[0], (HIDDEN, Q_DIM));       bq = w(ks[1], (Q_DIM,))
    wk = w(ks[2], (HIDDEN, KV_DIM));      bk = w(ks[3], (KV_DIM,))
    wv = w(ks[4], (HIDDEN, KV_DIM));      bv = w(ks[5], (KV_DIM,))
    wo = w(ks[6], (Q_DIM, HIDDEN))        # Qwen2 o_proj: no bias
    wg = w(ks[7], (HIDDEN, INTERMEDIATE))
    wu = w(ks[8], (HIDDEN, INTERMEDIATE))
    wd = w(ks[9], (INTERMEDIATE, HIDDEN))

    return {
        "ln1_w": jnp.ones((1, HIDDEN), jnp.float32),
        "ln2_w": jnp.ones((1, HIDDEN), jnp.float32),
        # fused, bf16 weights for the MXU (kernel accumulates in f32)
        "wqkv": jnp.concatenate([wq, wk, wv], axis=1).astype(jnp.bfloat16),
        "bqkv": jnp.concatenate([bq, bk, bv]).reshape(1, QKV_DIM),
        "wo": wo.astype(jnp.bfloat16),
        "wgu": jnp.concatenate([wg, wu], axis=1).astype(jnp.bfloat16),
        "wd": wd.astype(jnp.bfloat16),
    }


if __name__ == "__main__":
    key = jax.random.PRNGKey(0)
    pkey, xkey = jax.random.split(key)

    params = init_params(pkey)

    hidden_states = jax.random.normal(xkey, (BATCH, SEQ, HIDDEN), jnp.float32)
    position_ids = jnp.broadcast_to(
        jnp.arange(SEQ, dtype=jnp.int32)[None, :], (BATCH, SEQ)
    )
    causal = jnp.triu(jnp.full((SEQ, SEQ), -1e9, jnp.float32), k=1)
    attention_mask = jnp.broadcast_to(causal[None, None], (BATCH, 1, SEQ, SEQ))

    fwd = jax.jit(functools.partial(block_forward, params))
    out_hidden, present_k, present_v = fwd(hidden_states, position_ids, attention_mask)
    jax.block_until_ready((out_hidden, present_k, present_v))

    assert out_hidden.shape == (BATCH, SEQ, HIDDEN)
    assert present_k.shape == (BATCH, N_KV_HEADS, SEQ, HEAD_DIM)
    assert present_v.shape == (BATCH, N_KV_HEADS, SEQ, HEAD_DIM)
    assert out_hidden.dtype == jnp.float32
    assert bool(jnp.all(jnp.isfinite(out_hidden)))
    assert bool(jnp.all(jnp.isfinite(present_k)))
    assert bool(jnp.all(jnp.isfinite(present_v)))

    print("KERNEL_OK")
</pallas_src>

<mosaic_0001>
module attributes {stable_mosaic.version = 11 : i64} {
  func.func @_qwen2_block_kernel(%arg0: memref<16x32xf32, #tpu.memory_space<vmem>>, %arg1: memref<1x32xf32, #tpu.memory_space<vmem>>, %arg2: memref<32x64xbf16, #tpu.memory_space<vmem>>, %arg3: memref<1x64xf32, #tpu.memory_space<vmem>>, %arg4: memref<32x32xbf16, #tpu.memory_space<vmem>>, %arg5: memref<1x32xf32, #tpu.memory_space<vmem>>, %arg6: memref<32x128xbf16, #tpu.memory_space<vmem>>, %arg7: memref<64x32xbf16, #tpu.memory_space<vmem>>, %arg8: memref<16x8xf32, #tpu.memory_space<vmem>>, %arg9: memref<16x8xf32, #tpu.memory_space<vmem>>, %arg10: memref<16x32xf32, #tpu.memory_space<vmem>>, %arg11: memref<2x8x16xf32, #tpu.memory_space<vmem>>, %arg12: memref<2x8x16xf32, #tpu.memory_space<vmem>>) attributes {dimension_semantics = [], scalar_prefetch = 0 : i64, scratch_operands = 0 : i64, tpu.core_type = #tpu.core_type<tc>} {
    %c0 = arith.constant 0 : index
    %c0_0 = arith.constant 0 : index
    %0 = vector.load %arg0[%c0, %c0_0] : memref<16x32xf32, #tpu.memory_space<vmem>>, vector<16x32xf32>
    %1 = arith.mulf %0, %0 : vector<16x32xf32>
    %cst = arith.constant dense<0.000000e+00> : vector<16xf32>
    %2 = vector.multi_reduction <add>, %1, %cst [1] : vector<16x32xf32> to vector<16xf32>
    %3 = vector.shape_cast %2 : vector<16xf32> to vector<16x1xf32>
    %cst_1 = arith.constant 3.200000e+01 : f32
    %4 = vector.broadcast %cst_1 : f32 to vector<16x1xf32>
    %5 = arith.divf %3, %4 : vector<16x1xf32>
    %cst_2 = arith.constant 9.99999997E-7 : f32
    %6 = vector.broadcast %cst_2 : f32 to vector<16x1xf32>
    %7 = arith.addf %5, %6 : vector<16x1xf32>
    %8 = math.rsqrt %7 : vector<16x1xf32>
    %9 = vector.broadcast %8 : vector<16x1xf32> to vector<16x32xf32>
    %10 = arith.mulf %0, %9 : vector<16x32xf32>
    %c0_3 = arith.constant 0 : index
    %c0_4 = arith.constant 0 : index
    %11 = vector.load %arg1[%c0_3, %c0_4] : memref<1x32xf32, #tpu.memory_space<vmem>>, vector<1x32xf32>
    %12 = vector.broadcast %11 : vector<1x32xf32> to vector<16x32xf32>
    %13 = arith.mulf %10, %12 : vector<16x32xf32>
    %14 = arith.truncf %13 : vector<16x32xf32> to vector<16x32xbf16>
    %c0_5 = arith.constant 0 : index
    %c0_6 = arith.constant 0 : index
    %15 = vector.load %arg2[%c0_5, %c0_6] : memref<32x64xbf16, #tpu.memory_space<vmem>>, vector<32x64xbf16>
    %cst_7 = arith.constant dense<0.000000e+00> : vector<16x64xf32>
    %16 = tpu.matmul %14, %15, %cst_7 {dimension_numbers = #tpu.dot_dimension_numbers<[1], [0], [0], [1], [0, 0, 1, 1], [], []>} : vector<16x32xbf16>, vector<32x64xbf16>, vector<16x64xf32> -> vector<16x64xf32>
    %c0_8 = arith.constant 0 : index
    %c0_9 = arith.constant 0 : index
    %17 = vector.load %arg3[%c0_8, %c0_9] : memref<1x64xf32, #tpu.memory_space<vmem>>, vector<1x64xf32>
    %18 = vector.broadcast %17 : vector<1x64xf32> to vector<16x64xf32>
    %19 = arith.addf %16, %18 : vector<16x64xf32>
    %20 = vector.extract_strided_slice %19 {offsets = [0, 0], sizes = [16, 32], strides = [1, 1]} : vector<16x64xf32> to vector<16x32xf32>
    %21 = vector.shape_cast %20 : vector<16x32xf32> to vector<2x8x4x8xf32>
    %22 = vector.extract_strided_slice %19 {offsets = [0, 32], sizes = [16, 16], strides = [1, 1]} : vector<16x64xf32> to vector<16x16xf32>
    %23 = vector.shape_cast %22 : vector<16x16xf32> to vector<2x8x2x8xf32>
    %24 = vector.extract_strided_slice %19 {offsets = [0, 48], sizes = [16, 16], strides = [1, 1]} : vector<16x64xf32> to vector<16x16xf32>
    %25 = vector.shape_cast %24 : vector<16x16xf32> to vector<2x8x2x8xf32>
    %c0_10 = arith.constant 0 : index
    %c0_11 = arith.constant 0 : index
    %26 = vector.load %arg8[%c0_10, %c0_11] : memref<16x8xf32, #tpu.memory_space<vmem>>, vector<16x8xf32>
    %27 = vector.shape_cast %26 : vector<16x8xf32> to vector<2x8x1x8xf32>
    %c0_12 = arith.constant 0 : index
    %c0_13 = arith.constant 0 : index
    %28 = vector.load %arg9[%c0_12, %c0_13] : memref<16x8xf32, #tpu.memory_space<vmem>>, vector<16x8xf32>
    %29 = vector.shape_cast %28 : vector<16x8xf32> to vector<2x8x1x8xf32>
    %30 = vector.broadcast %27 : vector<2x8x1x8xf32> to vector<2x8x4x8xf32>
    %31 = arith.mulf %21, %30 : vector<2x8x4x8xf32>
    %32 = vector.extract_strided_slice %21 {offsets = [0, 0, 0, 4], sizes = [2, 8, 4, 4], strides = [1, 1, 1, 1]} : vector<2x8x4x8xf32> to vector<2x8x4x4xf32>
    %cst_14 = arith.constant 0.000000e+00 : f32
    %33 = vector.broadcast %cst_14 : f32 to vector<2x8x4x4xf32>
    %34 = arith.subf %33, %32 : vector<2x8x4x4xf32>
    %35 = vector.extract_strided_slice %21 {offsets = [0, 0, 0, 0], sizes = [2, 8, 4, 4], strides = [1, 1, 1, 1]} : vector<2x8x4x8xf32> to vector<2x8x4x4xf32>
    %36 = tpu.concatenate %34, %35 in 3 : vector<2x8x4x4xf32>, vector<2x8x4x4xf32> -> vector<2x8x4x8xf32>
    %37 = vector.broadcast %29 : vector<2x8x1x8xf32> to vector<2x8x4x8xf32>
    %38 = arith.mulf %36, %37 : vector<2x8x4x8xf32>
    %39 = arith.addf %31, %38 : vector<2x8x4x8xf32>
    %40 = vector.broadcast %27 : vector<2x8x1x8xf32> to vector<2x8x2x8xf32>
    %41 = arith.mulf %23, %40 : vector<2x8x2x8xf32>
    %42 = vector.extract_strided_slice %23 {offsets = [0, 0, 0, 4], sizes = [2, 8, 2, 4], strides = [1, 1, 1, 1]} : vector<2x8x2x8xf32> to vector<2x8x2x4xf32>
    %cst_15 = arith.constant 0.000000e+00 : f32
    %43 = vector.broadcast %cst_15 : f32 to vector<2x8x2x4xf32>
    %44 = arith.subf %43, %42 : vector<2x8x2x4xf32>
    %45 = vector.extract_strided_slice %23 {offsets = [0, 0, 0, 0], sizes = [2, 8, 2, 4], strides = [1, 1, 1, 1]} : vector<2x8x2x8xf32> to vector<2x8x2x4xf32>
    %46 = tpu.concatenate %44, %45 in 3 : vector<2x8x2x4xf32>, vector<2x8x2x4xf32> -> vector<2x8x2x8xf32>
    %47 = vector.broadcast %29 : vector<2x8x1x8xf32> to vector<2x8x2x8xf32>
    %48 = arith.mulf %46, %47 : vector<2x8x2x8xf32>
    %49 = arith.addf %41, %48 : vector<2x8x2x8xf32>
    %50 = vector.shape_cast %49 : vector<2x8x2x8xf32> to vector<2x8x16xf32>
    %c0_16 = arith.constant 0 : index
    %c0_17 = arith.constant 0 : index
    %c0_18 = arith.constant 0 : index
    %51 = vector.load %arg11[%c0_16, %c0_17, %c0_18] : memref<2x8x16xf32, #tpu.memory_space<vmem>>, vector<2x8x16xf32>
    tpu.vector_store %arg11[%c0_16, %c0_17, %c0_18], %50 {strides = array<i32>} : memref<2x8x16xf32, #tpu.memory_space<vmem>>, vector<2x8x16xf32>,
    %52 = vector.shape_cast %24 : vector<16x16xf32> to vector<2x8x16xf32>
    %c0_19 = arith.constant 0 : index
    %c0_20 = arith.constant 0 : index
    %c0_21 = arith.constant 0 : index
    %53 = vector.load %arg12[%c0_19, %c0_20, %c0_21] : memref<2x8x16xf32, #tpu.memory_space<vmem>>, vector<2x8x16xf32>
    tpu.vector_store %arg12[%c0_19, %c0_20, %c0_21], %52 {strides = array<i32>} : memref<2x8x16xf32, #tpu.memory_space<vmem>>, vector<2x8x16xf32>,
    %54 = tpu.iota {dimensions = array<i32: 0>} : vector<8x8xi32>
    %55 = tpu.iota {dimensions = array<i32: 1>} : vector<8x8xi32>
    %56 = arith.cmpi sge, %54, %55 : vector<8x8xi32>
    %cst_22 = arith.constant 0.000000e+00 : f32
    %cst_23 = arith.constant -1.000000e+09 : f32
    %57 = vector.broadcast %cst_22 : f32 to vector<8x8xf32>
    %58 = vector.broadcast %cst_23 : f32 to vector<8x8xf32>
    %59 = arith.select %56, %57, %58 : vector<8x8xi1>, vector<8x8xf32>
    %60 = arith.truncf %39 : vector<2x8x4x8xf32> to vector<2x8x4x8xbf16>
    %61 = arith.truncf %49 : vector<2x8x2x8xf32> to vector<2x8x2x8xbf16>
    %62 = arith.truncf %25 : vector<2x8x2x8xf32> to vector<2x8x2x8xbf16>
    %63 = vector.extract_strided_slice %60 {offsets = [0, 0, 0, 0], sizes = [2, 8, 1, 8], strides = [1, 1, 1, 1]} : vector<2x8x4x8xbf16> to vector<2x8x1x8xbf16>
    %64 = vector.shape_cast %63 : vector<2x8x1x8xbf16> to vector<2x8x8xbf16>
    %65 = vector.extract_strided_slice %61 {offsets = [0, 0, 0, 0], sizes = [2, 8, 1, 8], strides = [1, 1, 1, 1]} : vector<2x8x2x8xbf16> to vector<2x8x1x8xbf16>
    %66 = vector.shape_cast %65 : vector<2x8x1x8xbf16> to vector<2x8x8xbf16>
    %67 = vector.extract_strided_slice %62 {offsets = [0, 0, 0, 0], sizes = [2, 8, 1, 8], strides = [1, 1, 1, 1]} : vector<2x8x2x8xbf16> to vector<2x8x1x8xbf16>
    %68 = vector.shape_cast %67 : vector<2x8x1x8xbf16> to vector<2x8x8xbf16>
    "tpu.trace_start"() <{level = 10 : i32, message = "bqd,bkd->bqk"}> : () -> ()
    %cst_24 = arith.constant dense<0.000000e+00> : vector<2x8x8xf32>
    %69 = tpu.matmul %64, %66, %cst_24 {dimension_numbers = #tpu.dot_dimension_numbers<[2], [2], [1], [1], [0, 0, 0, 1, 1, 1], [0], [0]>} : vector<2x8x8xbf16>, vector<2x8x8xbf16>, vector<2x8x8xf32> -> vector<2x8x8xf32>
    "tpu.trace_stop"() : () -> ()
    %cst_25 = arith.constant 0.353553385 : f32
    %70 = vector.broadcast %cst_25 : f32 to vector<2x8x8xf32>
    %71 = arith.mulf %69, %70 : vector<2x8x8xf32>
    %72 = vector.shape_cast %59 : vector<8x8xf32> to vector<1x8x8xf32>
    %73 = vector.broadcast %72 : vector<1x8x8xf32> to vector<2x8x8xf32>
    %74 = arith.addf %71, %73 : vector<2x8x8xf32>
    %cst_26 = arith.constant dense<0xFF800000> : vector<2x8xf32>
    %75 = vector.multi_reduction <maximumf>, %74, %cst_26 [2] : vector<2x8x8xf32> to vector<2x8xf32>
    %76 = vector.shape_cast %75 : vector<2x8xf32> to vector<2x8x1xf32>
    %77 = vector.broadcast %76 : vector<2x8x1xf32> to vector<2x8x8xf32>
    %78 = arith.subf %74, %77 : vector<2x8x8xf32>
    %79 = math.exp %78 : vector<2x8x8xf32>
    %cst_27 = arith.constant dense<0.000000e+00> : vector<2x8xf32>
    %80 = vector.multi_reduction <add>, %79, %cst_27 [2] : vector<2x8x8xf32> to vector<2x8xf32>
    %81 = vector.shape_cast %80 : vector<2x8xf32> to vector<2x8x1xf32>
    %82 = arith.truncf %79 : vector<2x8x8xf32> to vector<2x8x8xbf16>
    "tpu.trace_start"() <{level = 10 : i32, message = "bqk,bkd->bqd"}> : () -> ()
    %cst_28 = arith.constant dense<0.000000e+00> : vector<2x8x8xf32>
    %83 = tpu.matmul %82, %68, %cst_28 {dimension_numbers = #tpu.dot_dimension_numbers<[2], [1], [1], [2], [0, 0, 0, 1, 1, 2], [0], [0]>} : vector<2x8x8xbf16>, vector<2x8x8xbf16>, vector<2x8x8xf32> -> vector<2x8x8xf32>
    "tpu.trace_stop"() : () -> ()
    %84 = tpu.reciprocal %81 {approx = true} : vector<2x8x1xf32> -> vector<2x8x1xf32>
    %85 = vector.broadcast %84 : vector<2x8x1xf32> to vector<2x8x8xf32>
    %86 = arith.mulf %83, %85 : vector<2x8x8xf32>
    %87 = vector.extract_strided_slice %60 {offsets = [0, 0, 1, 0], sizes = [2, 8, 1, 8], strides = [1, 1, 1, 1]} : vector<2x8x4x8xbf16> to vector<2x8x1x8xbf16>
    %88 = vector.shape_cast %87 : vector<2x8x1x8xbf16> to vector<2x8x8xbf16>
    %89 = vector.extract_strided_slice %61 {offsets = [0, 0, 0, 0], sizes = [2, 8, 1, 8], strides = [1, 1, 1, 1]} : vector<2x8x2x8xbf16> to vector<2x8x1x8xbf16>
    %90 = vector.shape_cast %89 : vector<2x8x1x8xbf16> to vector<2x8x8xbf16>
    %91 = vector.extract_strided_slice %62 {offsets = [0, 0, 0, 0], sizes = [2, 8, 1, 8], strides = [1, 1, 1, 1]} : vector<2x8x2x8xbf16> to vector<2x8x1x8xbf16>
    %92 = vector.shape_cast %91 : vector<2x8x1x8xbf16> to vector<2x8x8xbf16>
    "tpu.trace_start"() <{level = 10 : i32, message = "bqd,bkd->bqk"}> : () -> ()
    %cst_29 = arith.constant dense<0.000000e+00> : vector<2x8x8xf32>
    %93 = tpu.matmul %88, %90, %cst_29 {dimension_numbers = #tpu.dot_dimension_numbers<[2], [2], [1], [1], [0, 0, 0, 1, 1, 1], [0], [0]>} : vector<2x8x8xbf16>, vector<2x8x8xbf16>, vector<2x8x8xf32> -> vector<2x8x8xf32>
    "tpu.trace_stop"() : () -> ()
    %cst_30 = arith.constant 0.353553385 : f32
    %94 = vector.broadcast %cst_30 : f32 to vector<2x8x8xf32>
    %95 = arith.mulf %93, %94 : vector<2x8x8xf32>
    %96 = vector.shape_cast %59 : vector<8x8xf32> to vector<1x8x8xf32>
    %97 = vector.broadcast %96 : vector<1x8x8xf32> to vector<2x8x8xf32>
    %98 = arith.addf %95, %97 : vector<2x8x8xf32>
    %cst_31 = arith.constant dense<0xFF800000> : vector<2x8xf32>
    %99 = vector.multi_reduction <maximumf>, %98, %cst_31 [2] : vector<2x8x8xf32> to vector<2x8xf32>
    %100 = vector.shape_cast %99 : vector<2x8xf32> to vector<2x8x1xf32>
    %101 = vector.broadcast %100 : vector<2x8x1xf32> to vector<2x8x8xf32>
    %102 = arith.subf %98, %101 : vector<2x8x8xf32>
    %103 = math.exp %102 : vector<2x8x8xf32>
    %cst_32 = arith.constant dense<0.000000e+00> : vector<2x8xf32>
    %104 = vector.multi_reduction <add>, %103, %cst_32 [2] : vector<2x8x8xf32> to vector<2x8xf32>
    %105 = vector.shape_cast %104 : vector<2x8xf32> to vector<2x8x1xf32>
    %106 = arith.truncf %103 : vector<2x8x8xf32> to vector<2x8x8xbf16>
    "tpu.trace_start"() <{level = 10 : i32, message = "bqk,bkd->bqd"}> : () -> ()
    %cst_33 = arith.constant dense<0.000000e+00> : vector<2x8x8xf32>
    %107 = tpu.matmul %106, %92, %cst_33 {dimension_numbers = #tpu.dot_dimension_numbers<[2], [1], [1], [2], [0, 0, 0, 1, 1, 2], [0], [0]>} : vector<2x8x8xbf16>, vector<2x8x8xbf16>, vector<2x8x8xf32> -> vector<2x8x8xf32>
    "tpu.trace_stop"() : () -> ()
    %108 = tpu.reciprocal %105 {approx = true} : vector<2x8x1xf32> -> vector<2x8x1xf32>
    %109 = vector.broadcast %108 : vector<2x8x1xf32> to vector<2x8x8xf32>
    %110 = arith.mulf %107, %109 : vector<2x8x8xf32>
    %111 = vector.extract_strided_slice %60 {offsets = [0, 0, 2, 0], sizes = [2, 8, 1, 8], strides = [1, 1, 1, 1]} : vector<2x8x4x8xbf16> to vector<2x8x1x8xbf16>
    %112 = vector.shape_cast %111 : vector<2x8x1x8xbf16> to vector<2x8x8xbf16>
    %113 = vector.extract_strided_slice %61 {offsets = [0, 0, 1, 0], sizes = [2, 8, 1, 8], strides = [1, 1, 1, 1]} : vector<2x8x2x8xbf16> to vector<2x8x1x8xbf16>
    %114 = vector.shape_cast %113 : vector<2x8x1x8xbf16> to vector<2x8x8xbf16>
    %115 = vector.extract_strided_slice %62 {offsets = [0, 0, 1, 0], sizes = [2, 8, 1, 8], strides = [1, 1, 1, 1]} : vector<2x8x2x8xbf16> to vector<2x8x1x8xbf16>
    %116 = vector.shape_cast %115 : vector<2x8x1x8xbf16> to vector<2x8x8xbf16>
    "tpu.trace_start"() <{level = 10 : i32, message = "bqd,bkd->bqk"}> : () -> ()
    %cst_34 = arith.constant dense<0.000000e+00> : vector<2x8x8xf32>
    %117 = tpu.matmul %112, %114, %cst_34 {dimension_numbers = #tpu.dot_dimension_numbers<[2], [2], [1], [1], [0, 0, 0, 1, 1, 1], [0], [0]>} : vector<2x8x8xbf16>, vector<2x8x8xbf16>, vector<2x8x8xf32> -> vector<2x8x8xf32>
    "tpu.trace_stop"() : () -> ()
    %cst_35 = arith.constant 0.353553385 : f32
    %118 = vector.broadcast %cst_35 : f32 to vector<2x8x8xf32>
    %119 = arith.mulf %117, %118 : vector<2x8x8xf32>
    %120 = vector.shape_cast %59 : vector<8x8xf32> to vector<1x8x8xf32>
    %121 = vector.broadcast %120 : vector<1x8x8xf32> to vector<2x8x8xf32>
    %122 = arith.addf %119, %121 : vector<2x8x8xf32>
    %cst_36 = arith.constant dense<0xFF800000> : vector<2x8xf32>
    %123 = vector.multi_reduction <maximumf>, %122, %cst_36 [2] : vector<2x8x8xf32> to vector<2x8xf32>
    %124 = vector.shape_cast %123 : vector<2x8xf32> to vector<2x8x1xf32>
    %125 = vector.broadcast %124 : vector<2x8x1xf32> to vector<2x8x8xf32>
    %126 = arith.subf %122, %125 : vector<2x8x8xf32>
    %127 = math.exp %126 : vector<2x8x8xf32>
    %cst_37 = arith.constant dense<0.000000e+00> : vector<2x8xf32>
    %128 = vector.multi_reduction <add>, %127, %cst_37 [2] : vector<2x8x8xf32> to vector<2x8xf32>
    %129 = vector.shape_cast %128 : vector<2x8xf32> to vector<2x8x1xf32>
    %130 = arith.truncf %127 : vector<2x8x8xf32> to vector<2x8x8xbf16>
    "tpu.trace_start"() <{level = 10 : i32, message = "bqk,bkd->bqd"}> : () -> ()
    %cst_38 = arith.constant dense<0.000000e+00> : vector<2x8x8xf32>
    %131 = tpu.matmul %130, %116, %cst_38 {dimension_numbers = #tpu.dot_dimension_numbers<[2], [1], [1], [2], [0, 0, 0, 1, 1, 2], [0], [0]>} : vector<2x8x8xbf16>, vector<2x8x8xbf16>, vector<2x8x8xf32> -> vector<2x8x8xf32>
    "tpu.trace_stop"() : () -> ()
    %132 = tpu.reciprocal %129 {approx = true} : vector<2x8x1xf32> -> vector<2x8x1xf32>
    %133 = vector.broadcast %132 : vector<2x8x1xf32> to vector<2x8x8xf32>
    %134 = arith.mulf %131, %133 : vector<2x8x8xf32>
    %135 = vector.extract_strided_slice %60 {offsets = [0, 0, 3, 0], sizes = [2, 8, 1, 8], strides = [1, 1, 1, 1]} : vector<2x8x4x8xbf16> to vector<2x8x1x8xbf16>
    %136 = vector.shape_cast %135 : vector<2x8x1x8xbf16> to vector<2x8x8xbf16>
    %137 = vector.extract_strided_slice %61 {offsets = [0, 0, 1, 0], sizes = [2, 8, 1, 8], strides = [1, 1, 1, 1]} : vector<2x8x2x8xbf16> to vector<2x8x1x8xbf16>
    %138 = vector.shape_cast %137 : vector<2x8x1x8xbf16> to vector<2x8x8xbf16>
    %139 = vector.extract_strided_slice %62 {offsets = [0, 0, 1, 0], sizes = [2, 8, 1, 8], strides = [1, 1, 1, 1]} : vector<2x8x2x8xbf16> to vector<2x8x1x8xbf16>
    %140 = vector.shape_cast %139 : vector<2x8x1x8xbf16> to vector<2x8x8xbf16>
    "tpu.trace_start"() <{level = 10 : i32, message = "bqd,bkd->bqk"}> : () -> ()
    %cst_39 = arith.constant dense<0.000000e+00> : vector<2x8x8xf32>
    %141 = tpu.matmul %136, %138, %cst_39 {dimension_numbers = #tpu.dot_dimension_numbers<[2], [2], [1], [1], [0, 0, 0, 1, 1, 1], [0], [0]>} : vector<2x8x8xbf16>, vector<2x8x8xbf16>, vector<2x8x8xf32> -> vector<2x8x8xf32>
    "tpu.trace_stop"() : () -> ()
    %cst_40 = arith.constant 0.353553385 : f32
    %142 = vector.broadcast %cst_40 : f32 to vector<2x8x8xf32>
    %143 = arith.mulf %141, %142 : vector<2x8x8xf32>
    %144 = vector.shape_cast %59 : vector<8x8xf32> to vector<1x8x8xf32>
    %145 = vector.broadcast %144 : vector<1x8x8xf32> to vector<2x8x8xf32>
    %146 = arith.addf %143, %145 : vector<2x8x8xf32>
    %cst_41 = arith.constant dense<0xFF800000> : vector<2x8xf32>
    %147 = vector.multi_reduction <maximumf>, %146, %cst_41 [2] : vector<2x8x8xf32> to vector<2x8xf32>
    %148 = vector.shape_cast %147 : vector<2x8xf32> to vector<2x8x1xf32>
    %149 = vector.broadcast %148 : vector<2x8x1xf32> to vector<2x8x8xf32>
    %150 = arith.subf %146, %149 : vector<2x8x8xf32>
    %151 = math.exp %150 : vector<2x8x8xf32>
    %cst_42 = arith.constant dense<0.000000e+00> : vector<2x8xf32>
    %152 = vector.multi_reduction <add>, %151, %cst_42 [2] : vector<2x8x8xf32> to vector<2x8xf32>
    %153 = vector.shape_cast %152 : vector<2x8xf32> to vector<2x8x1xf32>
    %154 = arith.truncf %151 : vector<2x8x8xf32> to vector<2x8x8xbf16>
    "tpu.trace_start"() <{level = 10 : i32, message = "bqk,bkd->bqd"}> : () -> ()
    %cst_43 = arith.constant dense<0.000000e+00> : vector<2x8x8xf32>
    %155 = tpu.matmul %154, %140, %cst_43 {dimension_numbers = #tpu.dot_dimension_numbers<[2], [1], [1], [2], [0, 0, 0, 1, 1, 2], [0], [0]>} : vector<2x8x8xbf16>, vector<2x8x8xbf16>, vector<2x8x8xf32> -> vector<2x8x8xf32>
    "tpu.trace_stop"() : () -> ()
    %156 = tpu.reciprocal %153 {approx = true} : vector<2x8x1xf32> -> vector<2x8x1xf32>
    %157 = vector.broadcast %156 : vector<2x8x1xf32> to vector<2x8x8xf32>
    %158 = arith.mulf %155, %157 : vector<2x8x8xf32>
    %159 = tpu.concatenate %86, %110, %134, %158 in 2 : vector<2x8x8xf32>, vector<2x8x8xf32>, vector<2x8x8xf32>, vector<2x8x8xf32> -> vector<2x8x32xf32>
    %160 = vector.shape_cast %159 : vector<2x8x32xf32> to vector<16x32xf32>
    %161 = arith.truncf %160 : vector<16x32xf32> to vector<16x32xbf16>
    %c0_44 = arith.constant 0 : index
    %c0_45 = arith.constant 0 : index
    %162 = vector.load %arg4[%c0_44, %c0_45] : memref<32x32xbf16, #tpu.memory_space<vmem>>, vector<32x32xbf16>
    %cst_46 = arith.constant dense<0.000000e+00> : vector<16x32xf32>
    %163 = tpu.matmul %161, %162, %cst_46 {dimension_numbers = #tpu.dot_dimension_numbers<[1], [0], [0], [1], [0, 0, 1, 1], [], []>} : vector<16x32xbf16>, vector<32x32xbf16>, vector<16x32xf32> -> vector<16x32xf32>
    %164 = arith.addf %0, %163 : vector<16x32xf32>
    %165 = arith.mulf %164, %164 : vector<16x32xf32>
    %cst_47 = arith.constant dense<0.000000e+00> : vector<16xf32>
    %166 = vector.multi_reduction <add>, %165, %cst_47 [1] : vector<16x32xf32> to vector<16xf32>
    %167 = vector.shape_cast %166 : vector<16xf32> to vector<16x1xf32>
    %cst_48 = arith.constant 3.200000e+01 : f32
    %168 = vector.broadcast %cst_48 : f32 to vector<16x1xf32>
    %169 = arith.divf %167, %168 : vector<16x1xf32>
    %cst_49 = arith.constant 9.99999997E-7 : f32
    %170 = vector.broadcast %cst_49 : f32 to vector<16x1xf32>
    %171 = arith.addf %169, %170 : vector<16x1xf32>
    %172 = math.rsqrt %171 : vector<16x1xf32>
    %173 = vector.broadcast %172 : vector<16x1xf32> to vector<16x32xf32>
    %174 = arith.mulf %164, %173 : vector<16x32xf32>
    %c0_50 = arith.constant 0 : index
    %c0_51 = arith.constant 0 : index
    %175 = vector.load %arg5[%c0_50, %c0_51] : memref<1x32xf32, #tpu.memory_space<vmem>>, vector<1x32xf32>
    %176 = vector.broadcast %175 : vector<1x32xf32> to vector<16x32xf32>
    %177 = arith.mulf %174, %176 : vector<16x32xf32>
    %178 = arith.truncf %177 : vector<16x32xf32> to vector<16x32xbf16>
    %c0_52 = arith.constant 0 : index
    %c0_53 = arith.constant 0 : index
    %179 = vector.load %arg6[%c0_52, %c0_53] : memref<32x128xbf16, #tpu.memory_space<vmem>>, vector<32x128xbf16>
    %cst_54 = arith.constant dense<0.000000e+00> : vector<16x128xf32>
    %180 = tpu.matmul %178, %179, %cst_54 {dimension_numbers = #tpu.dot_dimension_numbers<[1], [0], [0], [1], [0, 0, 1, 1], [], []>} : vector<16x32xbf16>, vector<32x128xbf16>, vector<16x128xf32> -> vector<16x128xf32>
    %181 = vector.extract_strided_slice %180 {offsets = [0, 0], sizes = [16, 64], strides = [1, 1]} : vector<16x128xf32> to vector<16x64xf32>
    %182 = vector.extract_strided_slice %180 {offsets = [0, 64], sizes = [16, 64], strides = [1, 1]} : vector<16x128xf32> to vector<16x64xf32>
    %183 = arith.negf %181 : vector<16x64xf32>
    %184 = math.exp %183 : vector<16x64xf32>
    %cst_55 = arith.constant 1.000000e+00 : f32
    %185 = vector.broadcast %cst_55 : f32 to vector<16x64xf32>
    %186 = arith.addf %185, %184 : vector<16x64xf32>
    %187 = arith.divf %185, %186 : vector<16x64xf32>
    %188 = arith.mulf %181, %187 : vector<16x64xf32>
    %189 = arith.mulf %188, %182 : vector<16x64xf32>
    %190 = arith.truncf %189 : vector<16x64xf32> to vector<16x64xbf16>
    %c0_56 = arith.constant 0 : index
    %c0_57 = arith.constant 0 : index
    %191 = vector.load %arg7[%c0_56, %c0_57] : memref<64x32xbf16, #tpu.memory_space<vmem>>, vector<64x32xbf16>
    %cst_58 = arith.constant dense<0.000000e+00> : vector<16x32xf32>
    %192 = tpu.matmul %190, %191, %cst_58 {dimension_numbers = #tpu.dot_dimension_numbers<[1], [0], [0], [1], [0, 0, 1, 1], [], []>} : vector<16x64xbf16>, vector<64x32xbf16>, vector<16x32xf32> -> vector<16x32xf32>
    %193 = arith.addf %164, %192 : vector<16x32xf32>
    %c0_59 = arith.constant 0 : index
    %c0_60 = arith.constant 0 : index
    %194 = vector.load %arg10[%c0_59, %c0_60] : memref<16x32xf32, #tpu.memory_space<vmem>>, vector<16x32xf32>
    tpu.vector_store %arg10[%c0_59, %c0_60], %193 {strides = array<i32>} : memref<16x32xf32, #tpu.memory_space<vmem>>, vector<16x32xf32>,
    return
  }
}

</mosaic_0001>

<bundles_post_ra>
// kernel: block_forward.1
= control target key start
LH: loop header
LB: loop body
LE: loop exit
PB: predicated region body
PF: predicated region fallthrough
CT: control target
= control target key end

     0   :  { %vm44_vm0 = vcmask 261120   ;;  %s4909_s0 = inlined_call_operand.vmem [shape: f32[16,32], index: 0, kind: input, shape index: {}]   ;;  %s4910_s1 = inlined_call_operand.vmem [shape: f32[1,32], index: 1, kind: input, shape index: {}, may-alias: {1,5}]   ;;  %s4911_s2 = inlined_call_operand.vmem [shape: bf16[32,64], index: 2, kind: input, shape index: {}]   ;;  %s4912_s3 = inlined_call_operand.vmem [shape: f32[1,64], index: 3, kind: input, shape index: {}]   ;;  %s4913_s4 = inlined_call_operand.vmem [shape: bf16[32,32], index: 4, kind: input, shape index: {}]   ;;  %s4914_s5 = inlined_call_operand.vmem [shape: f32[1,32], index: 5, kind: input, shape index: {}, may-alias: {1,5}]   ;;  %s4915_s6 = inlined_call_operand.vmem [shape: bf16[32,128], index: 6, kind: input, shape index: {}]   ;;  %s4916_s7 = inlined_call_operand.vmem [shape: bf16[64,32], index: 7, kind: input, shape index: {}]   ;;  %s4917_s8 = inlined_call_operand.vmem [shape: f32[16,8], index: 8, kind: input, shape index: {}]   ;;  %s4918_s9 = inlined_call_operand.vmem [shape: f32[16,8], index: 9, kind: input, shape index: {}]   ;;  %s4919_s10 = inlined_call_operand.hbm [shape: f32[16,32], index: 10, kind: output, shape index: {0}]   ;;  %s4920_s11 = inlined_call_operand.vmem [shape: f32[2,8,16], index: 11, kind: output, shape index: {1}]   ;;  %s4921_s12 = inlined_call_operand.vmem [shape: f32[2,8,16], index: 12, kind: output, shape index: {2}]  }
   0x1   :  { %v40_v0 = vld [vmem:[%s4909_s0] sm:$0xff]  ;;  %v41_v1 = vld [vmem:[%s4909_s0 + $0x8] sm:$0xff] }
   0x2   :  { %v42_v2 = vmul.f32 %v40_v0, %v40_v0  ;;  %v43_v3 = vmul.f32 %v41_v1, %v41_v1 }
   0x4   :  { %v45_v4 = vsel %vm44_vm0, %v42_v2, 0.0  ;;  %v48_v5 = vsel %vm44_vm0, %v43_v3, 0.0 }
   0x5   :  { %46 = vadd.xlane.f32.xlu0 %v45_v4 }
   0x6   :  { %18 = vsyncpa [#allocation3], 0  ;;  %v3257_v6 = vld [vmem:[%s4911_s2] sm:$0xff]   ;;  %v4923_v7 = vmov 0.0   ;;  %vm3346_vm1 = vmmov 0   ;;  %v3258_v8 = vld [vmem:[%s4911_s2 + $0x8] sm:$0xff]   ;;  %v4922_v33 = vlaneseq }
   0x7   :  { %3091 = vmatprep.subr.bf16.mxu0 %v4923_v7  ;;  %3095 = vmatprep.mubr.msk.bf16.mxu0 %vm3346_vm1, %v4923_v7  ;;  %v3010_v18 = vld [vmem:[%s4910_s1] ss:$0 sm:$0xff]  ;;  %s3347_s14 = smov 96   ;;  %s3348_s1 = smov 120   ;;  %v3351_v31 = vmov 1983009808  }
   0x8   :  { %3092 = vmatpush3.bf16.msra.mxu0 %v3257_v6  ;;  %3099 = vmatprep.subr.bf16.mxu1 %v4923_v7  ;;  %v3011_v23 = vld [vmem:[%s4912_s3] ss:$0 sm:$0xff]  ;;  %s3349_s15 = smov 112   ;;  %s3350_s16 = smov 104   ;;  %v160_v32 = vunpack.c.l.s4 %v3351_v31  ;;  %v3352_v34 = vmov 1934713408  }
   0x9   :  { %49 = vadd.xlane.f32.xlu0 %v48_v5  ;;  %3093 = vmatprep.subr.bf16.mxu0 %v4923_v7  ;;  %v192_v35 = vunpack.c.l.s4 %v3352_v34  ;;  %v3479_v38 = vshrl.u32 %v4922_v33, 7  ;;  %s3353_s3 = smov 4   ;;  %s3354_s17 = smov 124   ;;  %vm1025_vm2 = vcmask 31744   ;;  %vm1549_vm3 = vcmask 1041409  }
   0xa   :  { %3101 = vmatprep.mubr.msk.bf16.mxu1 %vm3346_vm1, %v4923_v7  ;;  %v161_v37 = vunpack.c.0.s8 %v160_v32  ;;  %vm1552_vm4 = vcmask 1042434   ;;  %vm1555_vm5 = vcmask 1043459   ;;  %vm1558_vm6 = vcmask 1044484   ;;  %s3359_s2 = smov 16   ;;  %s3361_s26 = smov 64  }
   0xb   :  { %4965 = vst [vmem:[#allocation7_spill] sm:$0xff] %v3479_v38  ;;  %v193_v40 = vunpack.c.0.s8 %v192_v35  ;;  %vm1561_vm7 = vcmask 1045509   ;;  %vm1564_vm8 = vcmask 1046534   ;;  %vm1473_vm9 = vcmask 130048   ;;  %s3362_s29 = smov [#allocation2]  }
   0xc   :  { %3094 = vmatpush3.bf16.msra.mxu0 %v3258_v8  ;;  %v3483_v42 = vsub.s32 %v161_v37, %v3479_v38  ;;  %vm1567_vm10 = vcmask 1047559   ;;  %vm1470_vm11 = vcmask 64512   ;;  %vm1813_vm12 = vcmask 1043456   ;;  %s2991_s30 = sshll.u32 %s3362_s29, 4  ;;  %s2992_s30 = int_to_ptr.vmem [resolvable:$true] %s2991_s30 }
   0xd   :  { %3105 = vmatprep.subr.bf16.mxu0 %v4923_v7  ;;  %v3490_v47 = vsub.s32 %v193_v40, %v3479_v38  ;;  %vm2728_vm14 = vcmask 195584   ;;  %vm2937_vm15 = vcmask 523264   ;;  %s3321_s13 = scalar_lea.vmem %s2992_s30, 256  ;;  %p3326_p1 = scmp.lt.s32.totalorder %s2992_s30, %s2992_s30 }
   0xe   :  { %4966 = vst [vmem:[#allocation8_spill] sm:$0xff] %v3483_v42  ;;  %p3322_p0 = scmp.ne.s32.totalorder %s2992_s30, %s3321_s13  ;;  %p3327_p2 = scmp.lt.s32.totalorder %s3321_s13, %s3321_s13 }
   0xf   :  { %4967 = vst [vmem:[#allocation9_spill] sm:$0xff] %v3490_v47 }
  0x10   :  { %p3328_p3 = por %p3327_p2, %p3326_p1 }
  0x12   :  { %p3329_p4 = pnand %p3328_p3, %p3322_p0 }
  0x92   :  { %v47_v9 = vpop.xlane.xlu0 %46 }
  0x93   :  { %v52_v10 = vmul.f32 0.03125, %v47_v9 }
  0x95   :  { %v54_v11 = vadd.f32 1e-06, %v52_v10 }
  0x96   :  { %v50_v12 = vpop.xlane.xlu0 %49 }
  0x97   :  { %3271 = vrsqrt.f32 %v54_v11  ;;  %v53_v13 = vmul.f32 0.03125, %v50_v12 }
  0x99   :  { %v55_v14 = vadd.f32 1e-06, %v53_v13 }
  0x9b   :  { %3273 = vrsqrt.f32 %v55_v14 }
  0xa1   :  { %v3272_v15 = vpop.eup %3271 }
  0xa2   :  { %v58_v16 = vmul.f32 %v3272_v15, %v40_v0 }
  0xa4   :  { %v67_v20 = vmul.f32 %v3010_v18, %v58_v16 }
  0xa5   :  { %v3274_v17 = vpop.eup %3273 }
  0xa6   :  { %v59_v19 = vmul.f32 %v3274_v17, %v41_v1 }
  0xa8   :  { %v68_v21 = vmul.f32 %v3010_v18, %v59_v19 }
  0xaa   :  { %v69_v22 = vpack.c.bf16 %v68_v21, %v67_v20 }
  0xac   :  { %3096 = vmatmul.mubr.msk.bf16.vlgmr.msra.gmra.mrb[0].mxu0 %vm44_vm0, %v69_v22 }
  0xad   :  { %3107 = vmatprep.mubr.msk.bf16.mxu0 %vm3346_vm1, %v4923_v7 }
 0x17f   :  { %v130_v24 = vpop.f32.mrb[0].mxu0 }
 0x180   :  { %v3460_v25 = vadd.f32 %v3011_v23, %v130_v24  ;;  %v3097_v26 = vpop.f32.mrb[1].mxu0 }
 0x181   :  { %v133_v27 = vpop.f32.mrb[2].mxu0 }
 0x182   :  { %293 = vrot.lane.b32.xlu0 %v3460_v25, %s3347_s14  ;;  %139 = vrot.lane.b32.xlu1 %v3460_v25, %s3348_s1  ;;  %v3098_v28 = vpop.f32.mrb[3].mxu0  ;;  %v3465_v29 = vadd.f32 %v3011_v23, %v133_v27 }
 0x184   :  { %4963 = vst [vmem:[#allocation5_spill] sm:$0xff] %v3465_v29 }
 0x186   :  { %145 = vrot.lane.b32.xlu1 %v3460_v25, %s3349_s15  ;;  %153 = vrot.lane.b32.xlu0 %v3465_v29, %s3350_s16 }
 0x18a   :  { %151 = vrot.lane.b32.xlu1 %v3460_v25, %s3350_s16 }
 0x18e   :  { %141 = vrot.lane.b32.xlu1 %v3465_v29, %s3348_s1  ;;  %s3360_s1 = smov 24  }
 0x192   :  { %295 = vrot.lane.b32.xlu1 %v3465_v29, %s3347_s14 }
 0x196   :  { %147 = vrot.lane.b32.xlu1 %v3465_v29, %s3349_s15 }
 0x1f4   :  { %v3474_v30 = vpop.permute.xlu1 %139  ;;  %v3492_v48 = vpop.permute.xlu0 %293 }
 0x1f5   :  { %4964 = vst [vmem:[#allocation6_spill] sm:$0xff] %v3474_v30  ;;  %297 = vrot.lane.b32.xlu1 %v3474_v30, %s3347_s14 }
 0x1f8   :  { %v146_v36 = vpop.permute.xlu1 %145  ;;  %v154_v57 = vpop.permute.xlu0 %153 }
 0x1f9   :  { %v157_v39 = vcombine.low %v3460_v25, %v146_v36  ;;  %v158_v50 = vcombine.high %v3460_v25, %v146_v36 }
 0x1fb   :  { %v165_v44 = vrot.slane %v157_v39, %v3483_v42  ;;  %v172_v56 = vrot.slane %v158_v50, %v3483_v42  ;;  %v3355_v50 = vmov 1966171168  }
 0x1fc   :  { %v152_v41 = vpop.permute.xlu1 %151 }
 0x1fd   :  { %v173_v43 = vcombine.low %v3474_v30, %v152_v41  ;;  %v174_v45 = vcombine.high %v3474_v30, %v152_v41 }
 0x1ff   :  { %v181_v46 = vrot.slane %v173_v43, %v3483_v42  ;;  %v188_v52 = vrot.slane %v174_v45, %v3483_v42 }
 0x200   :  { %v3494_v49 = vpop.permute.xlu1 %141 }
 0x201   :  { %4968 = vst [vmem:[#allocation10_spill] sm:$0xff] %v3494_v49  ;;  %v190_v51 = vcombine.high %v165_v44, %v181_v46  ;;  %299 = vrot.lane.b32.xlu1 %v3494_v49, %s3347_s14  ;;  %v189_v53 = vcombine.low %v165_v44, %v181_v46  ;;  %v205_v58 = vcombine.low %v172_v56, %v188_v52 }
 0x202   :  { %v241_v59 = vcombine.low %v3494_v49, %v154_v57  ;;  %v206_v63 = vcombine.high %v172_v56, %v188_v52  ;;  %v242_v4 = vcombine.high %v3494_v49, %v154_v57  ;;  %v312_v44 = vrot.slane %v3492_v48, %v3483_v42 }
 0x203   :  { %v3501_v54 = vrot.slane %v190_v51, %v3490_v47  ;;  %v3510_v60 = vrot.slane %v189_v53, %v3490_v47  ;;  %v3519_v3 = vrot.slane %v205_v58, %v3490_v47  ;;  %v587_v51 = vunpack.c.l.s4 %v3355_v50  ;;  %v581_v58 = vld [vmem:[%s4917_s8] sm:$0xff] }
 0x204   :  { %v3503_v55 = vpop.permute.xlu1 %295  ;;  %v249_v0 = vrot.slane %v241_v59, %v3483_v42  ;;  %v3526_v8 = vrot.slane %v206_v63, %v3490_v47  ;;  %v256_v10 = vrot.slane %v242_v4, %v3483_v42 }
 0x205   :  { %981 = vrot.lane.b32.xlu1 %v3501_v54, %s3353_s3  ;;  %v3538_v12 = vcombine.high %v3510_v60, %v4923_v7  ;;  %v3542_v13 = vcombine.high %v3501_v54, %v4923_v7  ;;  %v883_v16 = vsub.f32 0.0, %v3501_v54  ;;  %v881_v18 = vsub.f32 0.0, %v3510_v60 }
 0x206   :  { %v885_v22 = vsub.f32 0.0, %v3519_v3  ;;  %v3579_v24 = vcombine.high %v3519_v3, %v4923_v7  ;;  %v887_v27 = vsub.f32 0.0, %v3526_v8  ;;  %v588_v56 = vunpack.c.0.s8 %v587_v51 }
 0x207   :  { %v884_v26 = vsub.f32 0.0, %v3542_v13  ;;  %v882_v31 = vsub.f32 0.0, %v3538_v12 }
 0x208   :  { %v148_v61 = vpop.permute.xlu1 %147  ;;  %v886_v36 = vsub.f32 0.0, %v3579_v24  ;;  %v3632_v59 = vsub.s32 %v588_v56, %v3479_v38 }
 0x209   :  { %v225_v62 = vcombine.low %v3465_v29, %v148_v61  ;;  %977 = vrot.lane.b32.xlu1 %v3510_v60, %s3353_s3  ;;  %v226_v1 = vcombine.high %v3465_v29, %v148_v61  ;;  %v4984_v29 = vmov 0.0  }
 0x20a   :  { %v592_v4 = vrot.slane %v581_v58, %v3632_v59 }
 0x20b   :  { %v233_v2 = vrot.slane %v225_v62, %v3483_v42  ;;  %v240_v6 = vrot.slane %v226_v1, %v3483_v42  ;;  %v378_v62 = vrot.slane %v3503_v55, %v3483_v42  ;;  %v585_v1 = vcombine.high %v581_v58, %v581_v58 }
 0x20d   :  { %v258_v5 = vcombine.high %v233_v2, %v249_v0  ;;  %985 = vrot.lane.b32.xlu1 %v3519_v3, %s3353_s3  ;;  %v273_v11 = vcombine.low %v240_v6, %v256_v10  ;;  %v257_v14 = vcombine.low %v233_v2, %v249_v0  ;;  %v274_v15 = vcombine.high %v240_v6, %v256_v10 }
 0x20f   :  { %v3529_v9 = vrot.slane %v258_v5, %v3490_v47  ;;  %v3550_v17 = vrot.slane %v273_v11, %v3490_v47  ;;  %v3557_v19 = vrot.slane %v274_v15, %v3490_v47  ;;  %v3560_v20 = vrot.slane %v257_v14, %v3490_v47  ;;  %v582_v15 = vld [vmem:[%s4917_s8 + $0x8] sm:$0xff] }
 0x211   :  { %989 = vrot.lane.b32.xlu1 %v3526_v8, %s3353_s3  ;;  %997 = vrot.lane.b32.xlu0 %v3529_v9, %s3353_s3  ;;  %v3567_v21 = vcombine.high %v3560_v20, %v4923_v7  ;;  %v891_v23 = vsub.f32 0.0, %v3529_v9  ;;  %v3588_v28 = vcombine.high %v3529_v9, %v4923_v7  ;;  %v893_v32 = vsub.f32 0.0, %v3550_v17 }
 0x212   :  { %v889_v34 = vsub.f32 0.0, %v3560_v20  ;;  %v3600_v35 = vcombine.high %v3550_v17, %v4923_v7  ;;  %v895_v37 = vsub.f32 0.0, %v3557_v19 }
 0x213   :  { %v890_v39 = vsub.f32 0.0, %v3567_v21  ;;  %v892_v40 = vsub.f32 0.0, %v3588_v28 }
 0x214   :  { %v894_v41 = vsub.f32 0.0, %v3600_v35 }
 0x215   :  { %979 = vrot.lane.b32.xlu1 %v3538_v12, %s3353_s3  ;;  %983 = vrot.lane.b32.xlu0 %v3542_v13, %s3353_s3 }
 0x219   :  { %917 = vrot.lane.b32.xlu1 %v883_v16, %s3354_s17  ;;  %1001 = vrot.lane.b32.xlu0 %v3550_v17, %s3353_s3  ;;  %v599_v16 = vrot.slane %v585_v1, %v3632_v59 }
 0x21d   :  { %913 = vrot.lane.b32.xlu1 %v881_v18, %s3354_s17  ;;  %1005 = vrot.lane.b32.xlu0 %v3557_v19, %s3353_s3  ;;  %v305_v18 = vcombine.high %v3492_v48, %v4923_v7 }
 0x221   :  { %993 = vrot.lane.b32.xlu1 %v3560_v20, %s3353_s3  ;;  %995 = vrot.lane.b32.xlu0 %v3567_v21, %s3353_s3 }
 0x225   :  { %921 = vrot.lane.b32.xlu1 %v885_v22, %s3354_s17  ;;  %933 = vrot.lane.b32.xlu0 %v891_v23, %s3354_s17  ;;  %v3663_v22 = vld [vmem:[%s4918_s9] sm:$0xff]  ;;  %v600_v23 = vcombine.high %v592_v4, %v592_v4 }
 0x229   :  { %987 = vrot.lane.b32.xlu1 %v3579_v24, %s3353_s3  ;;  %919 = vrot.lane.b32.xlu0 %v884_v26, %s3354_s17 }
 0x22d   :  { %925 = vrot.lane.b32.xlu1 %v887_v27, %s3354_s17  ;;  %999 = vrot.lane.b32.xlu0 %v3588_v28, %s3353_s3  ;;  %v608_v27 = vrot.slane %v592_v4, %v3632_v59 }
 0x231   :  { %915 = vrot.lane.b32.xlu1 %v882_v31, %s3354_s17  ;;  %937 = vrot.lane.b32.xlu0 %v893_v32, %s3354_s17  ;;  %v641_v31 = vrot.slane %v582_v15, %v3632_v59  ;;  %v634_v32 = vcombine.high %v582_v15, %v582_v15 }
 0x233   :  { %v657_v50 = vrot.slane %v641_v31, %v3632_v59  ;;  %v648_v51 = vrot.slane %v634_v32, %v3632_v59 }
 0x235   :  { %929 = vrot.lane.b32.xlu1 %v889_v34, %s3354_s17  ;;  %1003 = vrot.lane.b32.xlu0 %v3600_v35, %s3353_s3  ;;  %v679_v15 = vcombine.high %v657_v50, %v657_v50 }
 0x239   :  { %923 = vrot.lane.b32.xlu1 %v886_v36, %s3354_s17  ;;  %941 = vrot.lane.b32.xlu0 %v895_v37, %s3354_s17 }
 0x23d   :  { %931 = vrot.lane.b32.xlu0 %v890_v39, %s3354_s17  ;;  %v3680_v39 = vrot.slane %v3663_v22, %v3632_v59 }
 0x23f   :  { %v710_v58 = vrot.slane %v3680_v39, %v3632_v59 }
 0x241   :  { %935 = vrot.lane.b32.xlu0 %v892_v40, %s3354_s17  ;;  %v615_v40 = vrot.slane %v599_v16, %v3632_v59 }
 0x245   :  { %939 = vrot.lane.b32.xlu0 %v894_v41, %s3354_s17  ;;  %v319_v41 = vrot.slane %v305_v18, %v3483_v42 }
 0x267   :  { %v298_v43 = vpop.permute.xlu1 %297 }
 0x268   :  { %v327_v45 = vrot.slane %v298_v43, %v3483_v42  ;;  %v320_v6 = vcombine.high %v298_v43, %v4923_v7  ;;  %v622_v43 = vrot.slane %v600_v23, %v3632_v59 }
 0x26a   :  { %v336_v46 = vcombine.high %v312_v44, %v327_v45  ;;  %v335_v52 = vcombine.low %v312_v44, %v327_v45  ;;  %v334_v48 = vrot.slane %v320_v6, %v3483_v42  ;;  %v3689_v44 = vsub.s32 0, %v3479_v38 }
 0x26b   :  { %v632_v1 = vcombine.high %v622_v43, %v622_v43 }
 0x26c   :  { %v3619_v53 = vrot.slane %v336_v46, %v3490_v47  ;;  %v3624_v57 = vrot.slane %v335_v52, %v3490_v47  ;;  %4974 = vst [vmem:[#allocation16_spill] sm:$0xff] %v3689_v44  ;;  %v630_v46 = vcombine.high %v608_v27, %v608_v27  ;;  %v351_v52 = vcombine.low %v319_v41, %v334_v48 }
 0x26d   :  { %v352_v18 = vcombine.high %v319_v41, %v334_v48  ;;  %v3722_v33 = vrot.slane %v615_v40, %v3689_v44  ;;  %v371_v48 = vcombine.high %v3503_v55, %v4923_v7  ;;  %v3749_v55 = vrot.slane %v622_v43, %v3689_v44 }
 0x26e   :  { %4969 = vst [vmem:[#allocation11_spill] sm:$0xff] %v3619_v53  ;;  %1270 = vrot.lane.b32.xlu1 %v3619_v53, %s3353_s3  ;;  %4970 = vst [vmem:[#allocation12_spill] sm:$0xff] %v3624_v57  ;;  %v3639_v0 = vcombine.high %v3624_v57, %v4923_v7  ;;  %v1172_v14 = vsub.f32 0.0, %v3619_v53  ;;  %v1170_v36 = vsub.f32 0.0, %v3624_v57  ;;  %v3676_v37 = vcombine.high %v3619_v53, %v4923_v7 }
 0x26f   :  { %v3718_v32 = vrot.slane %v351_v52, %v3490_v47 }
 0x270   :  { %4971 = vst [vmem:[#allocation13_spill] sm:$0xff] %v3639_v0  ;;  %4973 = vst [vmem:[#allocation15_spill] sm:$0xff] %v3676_v37  ;;  %v1171_v49 = vsub.f32 0.0, %v3639_v0 }
 0x272   :  { %1266 = vrot.lane.b32.xlu1 %v3624_v57, %s3353_s3  ;;  %v3761_v57 = vrot.slane %v679_v15, %v3689_v44  ;;  %v687_v15 = vcombine.high %v3663_v22, %v3663_v22 }
 0x273   :  { %v300_v61 = vpop.permute.xlu1 %299 }
 0x274   :  { %v393_v63 = vrot.slane %v300_v61, %v3483_v42  ;;  %v386_v23 = vcombine.high %v300_v61, %v4923_v7  ;;  %v3738_v61 = vld [vmem:[%s4918_s9 + $0x8] sm:$0xff]  ;;  %s3356_s9 = smov 80  }
 0x275   :  { %v3768_v53 = vrot.slane %v3738_v61, %v3632_v59 }
 0x276   :  { %v402_v2 = vcombine.high %v378_v62, %v393_v63  ;;  %1268 = vrot.lane.b32.xlu1 %v3639_v0, %s3353_s3  ;;  %v401_v10 = vcombine.low %v378_v62, %v393_v63  ;;  %v631_v62 = vcombine.high %v615_v40, %v615_v40  ;;  %v601_v63 = vcombine.high %v599_v16, %v599_v16 }
 0x277   :  { %v3644_v5 = vpop.permute.xlu1 %981  ;;  %v664_v16 = vrot.slane %v648_v51, %v3632_v59  ;;  %v3741_v40 = vrot.slane %v632_v1, %v3689_v44  ;;  %v400_v38 = vrot.slane %v386_v23, %v3483_v42  ;;  %v3757_v1 = vrot.slane %v352_v18, %v3490_v47 }
 0x278   :  { %v3648_v11 = vrot.slane %v402_v2, %v3490_v47  ;;  %v3671_v34 = vrot.slane %v401_v10, %v3490_v47  ;;  %v649_v2 = vcombine.high %v641_v31, %v641_v31  ;;  %v3710_v10 = vrot.slane %v630_v46, %v3689_v44 }
 0x279   :  { %v3725_v46 = vrot.slane %v631_v62, %v3689_v44  ;;  %4980 = vst [vmem:[#allocation22_spill] sm:$0xff] %v3757_v1  ;;  %v385_v23 = vrot.slane %v371_v48, %v3483_v42 }
 0x27a   :  { %4972 = vst [vmem:[#allocation14_spill] sm:$0xff] %v3648_v11  ;;  %1206 = vrot.lane.b32.xlu1 %v1172_v14, %s3354_s17  ;;  %1286 = vrot.lane.b32.xlu0 %v3648_v11, %s3353_s3  ;;  %v3697_v56 = vcombine.high %v3671_v34, %v4923_v7  ;;  %4976 = vst [vmem:[#allocation18_spill] sm:$0xff] %v3710_v10  ;;  %v3713_v14 = vrot.slane %v608_v27, %v3689_v44  ;;  %v1180_v31 = vsub.f32 0.0, %v3648_v11 }
 0x27b   :  { %v3665_v26 = vpop.permute.xlu1 %977  ;;  %4977 = vst [vmem:[#allocation19_spill] sm:$0xff] %v3725_v46  ;;  %v3728_v27 = vrot.slane %v601_v63, %v3632_v59  ;;  %v671_v41 = vrot.slane %v649_v2, %v3632_v59  ;;  %v680_v63 = vcombine.high %v664_v16, %v664_v16  ;;  %v650_v7 = vcombine.high %v648_v51, %v648_v51 }
 0x27c   :  { %4975 = vst [vmem:[#allocation17_spill] sm:$0xff] %v3697_v56  ;;  %v1173_v2 = vsub.f32 0.0, %v3676_v37  ;;  %v3771_v51 = vrot.slane %v664_v16, %v3689_v44  ;;  %v3784_v16 = vrot.slane %v657_v50, %v3689_v44  ;;  %v3797_v30 = vcombine.high %v3648_v11, %v4984_v29 }
 0x27d   :  { %4978 = vst [vmem:[#allocation20_spill] sm:$0xff] %v3728_v27  ;;  %v681_v18 = vcombine.high %v671_v41, %v671_v41  ;;  %v3787_v48 = vrot.slane %v680_v63, %v3689_v44  ;;  %v3790_v42 = vrot.slane %v650_v7, %v3632_v59  ;;  %v3801_v50 = vrot.slane %v710_v58, %v3689_v44 }
 0x27e   :  { %1202 = vrot.lane.b32.xlu1 %v1170_v36, %s3354_s17  ;;  %1272 = vrot.lane.b32.xlu0 %v3676_v37, %s3353_s3  ;;  %v732_v36 = vcombine.high %v710_v58, %v710_v58  ;;  %4981 = vst [vmem:[#allocation23_spill] sm:$0xff] %v3771_v51  ;;  %4985 = vst [vmem:[#allocation26_spill] sm:$0xff] %v3797_v30  ;;  %v3805_v63 = vrot.slane %v3768_v53, %v3632_v59 }
 0x27f   :  { %v3691_v45 = vpop.permute.xlu1 %985  ;;  %4982 = vst [vmem:[#allocation24_spill] sm:$0xff] %v3787_v48  ;;  %4983 = vst [vmem:[#allocation25_spill] sm:$0xff] %v3790_v42  ;;  %v702_v7 = vcombine.high %v3680_v39, %v3680_v39  ;;  %v3819_v58 = vrot.slane %v681_v18, %v3689_v44  ;;  %v865_v39 = vmul.f32 %v3713_v14, %v3510_v60 }
 0x280   :  { %v3764_v43 = vrot.slane %v732_v36, %v3689_v44  ;;  %v869_v11 = vmul.f32 %v3722_v33, %v3519_v3  ;;  %v781_v60 = vcombine.high %v3805_v63, %v3805_v63 }
 0x281   :  { %4987 = vst [vmem:[#allocation28_spill] sm:$0xff] %v3819_v58  ;;  %v724_v3 = vrot.slane %v702_v7, %v3632_v59 }
 0x282   :  { %1282 = vrot.lane.b32.xlu1 %v3671_v34, %s3353_s3  ;;  %1284 = vrot.lane.b32.xlu0 %v3697_v56, %s3353_s3 }
 0x283   :  { %v3705_v4 = vpop.permute.xlu0 %997  ;;  %v3707_v6 = vpop.permute.xlu1 %989 }
 0x286   :  { %1274 = vrot.lane.b32.xlu1 %v3718_v32, %s3353_s3  ;;  %1222 = vrot.lane.b32.xlu0 %v1180_v31, %s3354_s17  ;;  %v3753_v31 = vrot.slane %v3728_v27, %v3689_v44  ;;  %v867_v27 = vmul.f32 %v3710_v10, %v3501_v54 }
 0x287   :  { %v3744_v52 = vpop.permute.xlu0 %983  ;;  %v3746_v62 = vpop.permute.xlu1 %979 }
 0x288   :  { %4979 = vst [vmem:[#allocation21_spill] sm:$0xff] %v3753_v31 }
 0x28a   :  { %1278 = vrot.lane.b32.xlu1 %v3757_v1, %s3353_s3  ;;  %1208 = vrot.lane.b32.xlu0 %v1173_v2, %s3354_s17  ;;  %v417_v2 = vcombine.low %v385_v23, %v400_v38 }
 0x28b   :  { %v3779_v36 = vpop.permute.xlu0 %1001  ;;  %v918_v37 = vpop.permute.xlu1 %917 }
 0x28c   :  { %v1028_v22 = vsel %vm1025_vm2, %v918_v37, %v3644_v5  ;;  %v3813_v5 = vrot.slane %v687_v15, %v3632_v59  ;;  %v3816_v37 = vrot.slane %v671_v41, %v3689_v44  ;;  %v3831_v15 = vrot.slane %v3790_v42, %v3689_v44 }
 0x28d   :  { %v1124_v54 = vmul.f32 %v3764_v43, %v1028_v22  ;;  %v418_v41 = vcombine.high %v385_v23, %v400_v38  ;;  %v736_v42 = vcombine.high %v3738_v61, %v3738_v61  ;;  %v3854_v23 = vmul.f32 %v3725_v46, %v3526_v8 }
 0x28e   :  { %1204 = vrot.lane.b32.xlu1 %v1171_v49, %s3354_s17  ;;  %1288 = vrot.lane.b32.xlu0 %v3797_v30, %s3353_s3  ;;  %4986 = vst [vmem:[#allocation27_spill] sm:$0xff] %v3816_v37  ;;  %4988 = vst [vmem:[#allocation29_spill] sm:$0xff] %v3831_v15  ;;  %v717_v38 = vrot.slane %v3813_v5, %v3632_v59  ;;  %v3885_v46 = vrot.slane %v781_v60, %v3689_v44 }
 0x28f   :  { %v3821_v22 = vadd.f32 %v1124_v54, %v867_v27  ;;  %v3823_v0 = vpop.permute.xlu0 %1005  ;;  %v914_v49 = vpop.permute.xlu1 %913  ;;  %v1178_v27 = vsub.f32 0.0, %v3671_v34  ;;  %v3837_v54 = vrot.slane %v417_v2, %v3490_v47 }
 0x290   :  { %v1026_v18 = vsel %vm1025_vm2, %v914_v49, %v3665_v26  ;;  %v868_v26 = vmul.f32 %v3741_v40, %v3542_v13  ;;  %v3864_v49 = vmul.f32 %v3749_v55, %v3538_v12  ;;  %v3872_v13 = vcombine.high %v3526_v8, %v4984_v29 }
 0x291   :  { %4989 = vst [vmem:[#allocation30_spill] sm:$0xff] %v3837_v54  ;;  %v1122_v10 = vmul.f32 %v3801_v50, %v1026_v18  ;;  %v3868_v18 = vmul.f32 %v3753_v31, %v3579_v24  ;;  %v3882_v12 = vmul.f32 %v3771_v51, %v3550_v17  ;;  %v734_v24 = vcombine.high %v724_v3, %v724_v3 }
 0x292   :  { %1218 = vrot.lane.b32.xlu1 %v1178_v27, %s3354_s17  ;;  %1290 = vrot.lane.b32.xlu0 %v3837_v54, %s3353_s3  ;;  %v1174_v27 = vsub.f32 0.0, %v3718_v32  ;;  %v750_v31 = vrot.slane %v736_v42, %v3632_v59  ;;  %v3890_v8 = vmul.f32 %v3784_v16, %v3560_v20  ;;  %v3900_v17 = vmul.f32 %v3787_v48, %v3557_v19 }
 0x293   :  { %v3856_v2 = vadd.f32 %v1122_v10, %v865_v39  ;;  %v3858_v7 = vpop.permute.xlu0 %995  ;;  %v3860_v61 = vpop.permute.xlu1 %993  ;;  %v3876_v10 = vrot.slane %v418_v41, %v3490_v47  ;;  %v875_v39 = vmul.f32 %v3761_v57, %v3529_v9  ;;  %v3896_v9 = vrot.slane %v717_v38, %v3689_v44 }
 0x294   :  { %v3904_v41 = vmul.f32 %v3816_v37, %v3567_v21  ;;  %v733_v20 = vcombine.high %v717_v38, %v717_v38  ;;  %v3910_v47 = vmul.f32 %v3819_v58, %v3588_v28  ;;  %v3914_v51 = vmul.f32 %v3831_v15, %v3600_v35 }
 0x295   :  { %4990 = vst [vmem:[#allocation31_spill] sm:$0xff] %v3876_v10  ;;  %4991 = vst [vmem:[#allocation32_spill] sm:$0xff] %v3896_v9  ;;  %v3922_v38 = vcombine.high %v3718_v32, %v4984_v29  ;;  %v3927_v28 = vrot.slane %v734_v24, %v3689_v44  ;;  %v766_v35 = vrot.slane %v750_v31, %v3632_v59 }
 0x296   :  { %1210 = vrot.lane.b32.xlu1 %v1174_v27, %s3354_s17  ;;  %1294 = vrot.lane.b32.xlu0 %v3876_v10, %s3353_s3  ;;  %v751_v27 = vcombine.high %v3768_v53, %v3768_v53  ;;  %v1179_v53 = vsub.f32 0.0, %v3697_v56  ;;  %v703_v15 = vcombine.high %v3813_v5, %v3813_v5  ;;  %v3944_v5 = vrot.slane %v733_v20, %v3689_v44 }
 0x297   :  { %v934_v42 = vpop.permute.xlu0 %933  ;;  %v922_v60 = vpop.permute.xlu1 %921  ;;  %4992 = vst [vmem:[#allocation33_spill] sm:$0xff] %v3922_v38 }
 0x298   :  { %v1036_v48 = vsel %vm1025_vm2, %v934_v42, %v3705_v4  ;;  %v1030_v21 = vsel %vm1025_vm2, %v922_v60, %v3691_v45  ;;  %v752_v42 = vcombine.high %v750_v31, %v750_v31  ;;  %4993 = vst [vmem:[#allocation34_spill] sm:$0xff] %v3944_v5  ;;  %v773_v56 = vrot.slane %v751_v27, %v3632_v59 }
 0x299   :  { %v1132_v37 = vmul.f32 %v3885_v46, %v1036_v48  ;;  %v1126_v4 = vmul.f32 %v3896_v9, %v1030_v21  ;;  %v3939_v48 = vcombine.high %v3557_v19, %v4984_v29  ;;  %v782_v21 = vcombine.high %v766_v35, %v766_v35 }
 0x29a   :  { %1276 = vrot.lane.b32.xlu1 %v3922_v38, %s3353_s3  ;;  %1220 = vrot.lane.b32.xlu0 %v1179_v53, %s3354_s17  ;;  %v1176_v31 = vsub.f32 0.0, %v3757_v1  ;;  %v1181_v45 = vsub.f32 0.0, %v3797_v30  ;;  %v3959_v20 = vrot.slane %v703_v15, %v3632_v59  ;;  %v3966_v27 = vrot.slane %v752_v42, %v3632_v59 }
 0x29b   :  { %v1148_v24 = vadd.f32 %v1132_v37, %v875_v39  ;;  %v920_v60 = vpop.permute.xlu0 %919  ;;  %v3941_v58 = vpop.permute.xlu1 %987  ;;  %v1142_v9 = vadd.f32 %v1126_v4, %v869_v11  ;;  %v3953_v37 = vrot.slane %v766_v35, %v3689_v44  ;;  %v3956_v39 = vrot.slane %v724_v3, %v3689_v44 }
 0x29c   :  { %v1029_v53 = vsel %vm1025_vm2, %v920_v60, %v3744_v52  ;;  %4995 = vst [vmem:[#allocation36_spill] sm:$0xff] %v3959_v20  ;;  %v1486_v11 = vpack.c.bf16 %v3821_v22, %v3821_v22  ;;  %v783_v52 = vcombine.high %v773_v56, %v773_v56  ;;  %4996 = vst [vmem:[#allocation37_spill] sm:$0xff] %v3966_v27  ;;  %v1182_v42 = vsub.f32 0.0, %v3837_v54 }
 0x29d   :  { %v1125_v19 = vmul.f32 %v3927_v28, %v1029_v53  ;;  %4994 = vst [vmem:[#allocation35_spill] sm:$0xff] %v3953_v37  ;;  %v1484_v3 = vpack.c.bf16 %v3856_v2, %v3856_v2  ;;  %v3975_v22 = vcombine.high %v3757_v1, %v4984_v29  ;;  %v3986_v2 = vcombine.high %v3837_v54, %v4984_v29 }
 0x29e   :  { %1214 = vrot.lane.b32.xlu1 %v1176_v31, %s3354_s17  ;;  %1224 = vrot.lane.b32.xlu0 %v1181_v45, %s3354_s17  ;;  %v3979_v45 = vrot.slane %v3805_v63, %v3689_v44  ;;  %v1494_v53 = vpack.c.bf16 %v1148_v24, %v1148_v24  ;;  %v3993_v31 = vrot.slane %v3959_v20, %v3689_v44  ;;  %v1175_v24 = vsub.f32 0.0, %v3922_v38 }
 0x29f   :  { %v1141_v4 = vadd.f32 %v1125_v19, %v868_v26  ;;  %v3971_v60 = vpop.permute.xlu0 %999  ;;  %v926_v15 = vpop.permute.xlu1 %925  ;;  %4997 = vst [vmem:[#allocation38_spill] sm:$0xff] %v3975_v22  ;;  %v3989_v26 = vrot.slane %v782_v21, %v3689_v44  ;;  %v3997_v63 = vcombine.high %v3876_v10, %v4984_v29  ;;  %v4002_v19 = vunpack.c.l.b16 %v1486_v11 }
 0x2a0   :  { %v1032_v59 = vsel %vm1025_vm2, %v926_v15, %v3707_v6  ;;  %v4000_v6 = vrot.slane %v773_v56, %v3689_v44  ;;  %v4009_v21 = vrot.slane %v783_v52, %v3689_v44  ;;  %v4013_v15 = vrot.slane %v3966_v27, %v3689_v44 }
 0x2a1   :  { %v4015_v35 = vunpack.c.l.b16 %v1484_v3  ;;  %v1488_v56 = vpack.c.bf16 %v1142_v9, %v1142_v9  ;;  %v1128_v11 = vmul.f32 %v3944_v5, %v1032_v59  ;;  %v1177_v54 = vsub.f32 0.0, %v3975_v22 }
 0x2a2   :  { %1280 = vrot.lane.b32.xlu1 %v3975_v22, %s3353_s3  ;;  %1226 = vrot.lane.b32.xlu0 %v1182_v42, %s3354_s17  ;;  %v1184_v38 = vsub.f32 0.0, %v3876_v10  ;;  %v4025_v3 = vunpack.c.l.b16 %v1494_v53  ;;  %v1487_v9 = vpack.c.bf16 %v1141_v4, %v1141_v4 }
 0x2a3   :  { %v938_v29 = vpop.permute.xlu0 %937  ;;  %v916_v20 = vpop.permute.xlu1 %915  ;;  %v1144_v59 = vadd.f32 %v1128_v11, %v3854_v23  ;;  %v1938_v23 = vrot.slane %v4015_v35, 1  ;;  %v4038_v4 = vunpack.c.l.b16 %v1488_v56  ;;  %v2470_v27 = vrot.slane %v4015_v35, 3 }
 0x2a4   :  { %v1038_v42 = vsel %vm1025_vm2, %v938_v29, %v3779_v36  ;;  %v1027_v52 = vsel %vm1025_vm2, %v916_v20, %v3746_v62  ;;  %v1940_v29 = vrot.slane %v4002_v19, 7  ;;  %v2473_v20 = vrot.slane %v4002_v19, 1 }
 0x2a5   :  { %v1134_v36 = vmul.f32 %v3953_v37, %v1038_v42  ;;  %v1123_v62 = vmul.f32 %v3956_v39, %v1027_v52  ;;  %v1490_v53 = vpack.c.bf16 %v1144_v59, %v1144_v59  ;;  %v2168_v42 = vrot.slane %v4015_v35, 2 }
 0x2a6   :  { %1212 = vrot.lane.b32.xlu1 %v1175_v24, %s3354_s17  ;;  %1292 = vrot.lane.b32.xlu0 %v3986_v2, %s3353_s3  ;;  %v4049_v37 = vunpack.c.l.b16 %v1487_v9 }
 0x2a7   :  { %v4040_v11 = vpop.permute.xlu0 %1003  ;;  %v930_v22 = vpop.permute.xlu1 %929  ;;  %v1150_v44 = vadd.f32 %v1134_v36, %v3882_v12  ;;  %v1139_v52 = vadd.f32 %v1123_v62, %v3864_v49  ;;  %v4053_v5 = vunpack.c.l.b16 %v1490_v53  ;;  %v1944_v12 = vrot.slane %v4038_v4, 5 }
 0x2a8   :  { %v1034_v24 = vsel %vm1025_vm2, %v930_v22, %v3860_v61  ;;  %v2172_v10 = vrot.slane %v4049_v37, 7 }
 0x2a9   :  { %v1130_v56 = vmul.f32 %v3979_v45, %v1034_v24  ;;  %v1496_v1 = vpack.c.bf16 %v1150_v44, %v1150_v44  ;;  %v1485_v30 = vpack.c.bf16 %v1139_v52, %v1139_v52  ;;  %v1942_v52 = vrot.slane %v4049_v37, 6 }
 0x2aa   :  { %1216 = vrot.lane.b32.xlu1 %v1177_v54, %s3354_s17  ;;  %1230 = vrot.lane.b32.xlu0 %v1184_v38, %s3354_s17  ;;  %v1554_v38 = vrot.slane %v4049_v37, 5 }
 0x2ab   :  { %v942_v9 = vpop.permute.xlu0 %941  ;;  %v924_v36 = vpop.permute.xlu1 %923  ;;  %v1541_v53 = vunpack.c.l.b16 %v1485_v30  ;;  %v1146_v44 = vadd.f32 %v1130_v56, %v3890_v8  ;;  %v4073_v8 = vunpack.c.l.b16 %v1496_v1 }
 0x2ac   :  { %v1040_v54 = vsel %vm1025_vm2, %v942_v9, %v3823_v0  ;;  %v1031_v61 = vsel %vm1025_vm2, %v924_v36, %v3941_v58  ;;  %v4998_v0 = vsub.f32 0.0, %v3872_v13 }
 0x2ad   :  { %v1136_v24 = vmul.f32 %v3989_v26, %v1040_v54  ;;  %v1548_v56 = vrot.slane %v1541_v53, 7  ;;  %v1939_v9 = vsel %vm1549_vm3, %v1541_v53, %v1938_v23  ;;  %v2169_v58 = vrot.slane %v1541_v53, 1 }
 0x2ae   :  { %927 = vrot.lane.b32.xlu1 %v4998_v0, %s3354_s17  ;;  %1296 = vrot.lane.b32.xlu0 %v3997_v63, %s3353_s3  ;;  %v2471_v36 = vrot.slane %v1541_v53, 2  ;;  %v1941_v62 = vsel %vm1552_vm4, %v1940_v29, %v1939_v9  ;;  %v1492_v59 = vpack.c.bf16 %v1146_v44, %v1146_v44  ;;  %v1127_v1 = vmul.f32 %v3993_v31, %v1031_v61 }
 0x2af   :  { %v932_v54 = vpop.permute.xlu0 %931  ;;  %v1152_v30 = vadd.f32 %v1136_v24, %v3900_v17  ;;  %v1550_v0 = vsel %vm1549_vm3, %v1548_v56, %v4015_v35  ;;  %v1943_v49 = vsel %vm1555_vm5, %v1942_v52, %v1941_v62  ;;  %v2170_v22 = vsel %vm1549_vm3, %v2169_v58, %v2168_v42 }
 0x2b0   :  { %v2472_v23 = vsel %vm1549_vm3, %v2471_v36, %v2470_v27  ;;  %v2171_v53 = vsel %vm1552_vm4, %v4002_v19, %v2170_v22  ;;  %v4092_v44 = vunpack.c.l.b16 %v1492_v59  ;;  %v4999_v35 = vsub.f32 0.0, %v3986_v2 }
 0x2b1   :  { %v2474_v29 = vsel %vm1552_vm4, %v2473_v20, %v2472_v23  ;;  %v1498_v17 = vpack.c.bf16 %v1152_v30, %v1152_v30  ;;  %v2178_v42 = vrot.slane %v4053_v5, 4  ;;  %v2480_v27 = vrot.slane %v4053_v5, 5 }
 0x2b2   :  { %991 = vrot.lane.b32.xlu1 %v3872_v13, %s3353_s3  ;;  %1228 = vrot.lane.b32.xlu0 %v4999_v35, %s3354_s17  ;;  %v1143_v61 = vadd.f32 %v1127_v1, %v3868_v18  ;;  %v1035_v20 = vsel %vm1025_vm2, %v932_v54, %v3858_v7  ;;  %v1669_v22 = vrot.slane %v4073_v8, 4  ;;  %v2534_v30 = vrot.slane %v4073_v8, 7 }
 0x2b3   :  { %v936_v59 = vpop.permute.xlu0 %935  ;;  %v4107_v24 = vunpack.c.l.b16 %v1498_v17  ;;  %v1131_v9 = vmul.f32 %v4000_v6, %v1035_v20  ;;  %v1996_v58 = vrot.slane %v4092_v44, 1  ;;  %v2244_v7 = vrot.slane %v4092_v44, 2 }
 0x2b4   :  { %v1489_v56 = vpack.c.bf16 %v1143_v61, %v1143_v61  ;;  %v1037_v18 = vsel %vm1025_vm2, %v936_v59, %v3971_v60  ;;  %v2528_v36 = vrot.slane %v4092_v44, 3  ;;  %v5000_v1 = vsub.f32 0.0, %v3997_v63 }
 0x2b5   :  { %v1147_v60 = vadd.f32 %v1131_v9, %v3904_v41  ;;  %v1133_v35 = vmul.f32 %v4009_v21, %v1037_v18  ;;  %v5001_v59 = vrot.slane %v4002_v19, 6  ;;  %v5002_v19 = vld [vmem:[#allocation6_spill] sm:$0xff] }
 0x2b6   :  { %437 = vrot.lane.b32.xlu1 %v3460_v25, %s3356_s9  ;;  %1232 = vrot.lane.b32.xlu0 %v5000_v1, %s3354_s17  ;;  %v1545_v17 = vunpack.c.l.b16 %v1489_v56  ;;  %v1945_v25 = vsel %vm1558_vm6, %v1944_v12, %v1943_v49  ;;  %v2173_v1 = vsel %vm1555_vm5, %v2172_v10, %v2171_v53  ;;  %v2254_v56 = vrot.slane %v4107_v24, 4 }
 0x2b7   :  { %v940_v61 = vpop.permute.xlu0 %939  ;;  %v1553_v54 = vsel %vm1552_vm4, %v5001_v59, %v1550_v0  ;;  %v1493_v52 = vpack.c.bf16 %v1147_v60, %v1147_v60  ;;  %v1149_v62 = vadd.f32 %v1133_v35, %v3910_v47  ;;  %v5003_v0 = vsub.f32 0.0, %v3939_v48 }
 0x2b8   :  { %v1039_v20 = vsel %vm1025_vm2, %v940_v61, %v4040_v11  ;;  %v1560_v23 = vrot.slane %v1545_v17, 3  ;;  %v1946_v41 = vrot.slane %v1545_v17, 4  ;;  %v2176_v9 = vrot.slane %v1545_v17, 5 }
 0x2b9   :  { %v2478_v18 = vrot.slane %v1545_v17, 6  ;;  %v1135_v11 = vmul.f32 %v4013_v15, %v1039_v20  ;;  %v1556_v10 = vsel %vm1555_vm5, %v1554_v38, %v1553_v54  ;;  %v5004_v12 = vrot.slane %v4038_v4, 6 }
 0x2ba   :  { %441 = vrot.lane.b32.xlu1 %v5002_v19, %s3356_s9  ;;  %943 = vrot.lane.b32.xlu0 %v5003_v0, %s3354_s17  ;;  %v1947_v49 = vsel %vm1561_vm7, %v1946_v41, %v1945_v25  ;;  %v2475_v47 = vsel %vm1555_vm5, %v4049_v37, %v2474_v29  ;;  %v1656_v17 = vunpack.c.l.b16 %v1493_v52  ;;  %v1495_v60 = vpack.c.bf16 %v1149_v62, %v1149_v62 }
 0x2bb   :  { %v2175_v53 = vsel %vm1558_vm6, %v5004_v12, %v2173_v1  ;;  %v1151_v35 = vadd.f32 %v1135_v11, %v3914_v51  ;;  %v5005_v61 = vrot.slane %v4038_v4, 4  ;;  %v5006_v38 = vrot.slane %v4053_v5, 3 }
 0x2bc   :  { %v2177_v25 = vsel %vm1561_vm7, %v2176_v9, %v2175_v53  ;;  %v5007_v1 = vrot.slane %v4038_v4, 7  ;;  %v1663_v29 = vrot.slane %v1656_v17, 7  ;;  %v1997_v51 = vsel %vm1549_vm3, %v1656_v17, %v1996_v58 }
 0x2bd   :  { %v1559_v20 = vsel %vm1558_vm6, %v5005_v61, %v1556_v10  ;;  %v4159_v54 = vsel %vm1564_vm8, %v5006_v38, %v1947_v49  ;;  %v2245_v62 = vrot.slane %v1656_v17, 1  ;;  %v2529_v52 = vrot.slane %v1656_v17, 2  ;;  %v5012_v61 = vld [vmem:[#allocation5_spill] sm:$0xff] }
 0x2be   :  { %v1562_v59 = vsel %vm1561_vm7, %v1560_v23, %v1559_v20  ;;  %v2477_v37 = vsel %vm1558_vm6, %v5007_v1, %v2475_v47  ;;  %1007 = vrot.lane.b32.xlu0 %v3939_v48, %s3353_s3  ;;  %v5008_v23 = vrot.slane %v4025_v3, 7  ;;  %v1658_v11 = vunpack.c.l.b16 %v1495_v60 }
 0x2bf   :  { %v1497_v19 = vpack.c.bf16 %v1151_v35, %v1151_v35  ;;  %v5009_v9 = vrot.slane %v4053_v5, 2  ;;  %v1664_v0 = vsel %vm1549_vm3, %v1663_v29, %v4092_v44  ;;  %v2246_v58 = vsel %vm1549_vm3, %v2245_v62, %v2244_v7 }
 0x2c0   :  { %v1999_v41 = vsel %vm1552_vm4, %v5008_v23, %v1997_v51  ;;  %v2530_v10 = vsel %vm1549_vm3, %v2529_v52, %v2528_v36  ;;  %v4183_v49 = vsel %vm1564_vm8, %v2178_v42, %v2177_v25  ;;  %v5010_v12 = vrot.slane %v4025_v3, 6  ;;  %v5014_v23 = vld [vmem:[#allocation10_spill] sm:$0xff] }
 0x2c1   :  { %v4174_v4 = vsel %vm1564_vm8, %v5009_v9, %v1562_v59  ;;  %v1667_v47 = vrot.slane %v1658_v11, 5  ;;  %v2000_v17 = vrot.slane %v1658_v11, 6  ;;  %v2247_v60 = vsel %vm1552_vm4, %v4025_v3, %v2246_v58 }
 0x2c2   :  { %v1666_v53 = vsel %vm1552_vm4, %v5010_v12, %v1664_v0  ;;  %v2248_v35 = vrot.slane %v1658_v11, 7  ;;  %v5011_v44 = vrot.slane %v4025_v3, 1  ;;  %v1660_v36 = vunpack.c.l.b16 %v1497_v19  ;;  %439 = vrot.lane.b32.xlu0 %v5012_v61, %s3356_s9 }
 0x2c3   :  { %v2479_v42 = vsel %vm1561_vm7, %v2478_v18, %v2477_v37  ;;  %v1668_v20 = vsel %vm1555_vm5, %v1667_v47, %v1666_v53  ;;  %v2001_v59 = vsel %vm1555_vm5, %v2000_v17, %v1999_v41  ;;  %v5013_v52 = vrot.slane %v4073_v8, 5 }
 0x2c4   :  { %v2532_v7 = vsel %vm1552_vm4, %v5011_v44, %v2530_v10  ;;  %v4202_v25 = vsel %vm1564_vm8, %v2480_v27, %v2479_v42  ;;  %v2249_v3 = vsel %vm1555_vm5, %v2248_v35, %v2247_v60  ;;  %v1671_v29 = vrot.slane %v1660_v36, 3 }
 0x2c5   :  { %v2533_v38 = vsel %vm1555_vm5, %v1658_v11, %v2532_v7  ;;  %v2004_v51 = vrot.slane %v1660_v36, 4  ;;  %v2252_v18 = vrot.slane %v1660_v36, 5  ;;  %v2536_v37 = vrot.slane %v1660_v36, 6 }
 0x2c6   :  { %v2535_v1 = vsel %vm1558_vm6, %v2534_v30, %v2533_v38  ;;  %v1670_v62 = vsel %vm1558_vm6, %v1669_v22, %v1668_v20  ;;  %v2003_v5 = vsel %vm1558_vm6, %v5013_v52, %v2001_v59  ;;  %v2538_v27 = vrot.slane %v4107_v24, 5  ;;  %443 = vrot.lane.b32.xlu0 %v5014_v23, %s3356_s9  ;;  %v5019_v59 = vld [vmem:[#allocation18_spill] sm:$0xff]  ;;  %v5020_v38 = vld [vmem:[#allocation12_spill] sm:$0xff] }
 0x2c7   :  { %v1672_v41 = vsel %vm1561_vm7, %v1671_v29, %v1670_v62  ;;  %v2005_v30 = vsel %vm1561_vm7, %v2004_v51, %v2003_v5  ;;  %v5015_v11 = vrot.slane %v4073_v8, 6  ;;  %v5016_v9 = vrot.slane %v4107_v24, 2 }
 0x2c8   :  { %v5017_v0 = vrot.slane %v4107_v24, 3  ;;  %v2537_v12 = vsel %vm1561_vm7, %v2536_v37, %v2535_v1  ;;  %v5018_v24 = vld [vmem:[#allocation11_spill] sm:$0xff] }
 0x2c9   :  { %v2251_v19 = vsel %vm1558_vm6, %v5015_v11, %v2249_v3  ;;  %v4225_v22 = vsel %vm1564_vm8, %v5016_v9, %v1672_v41  ;;  %v4240_v53 = vsel %vm1564_vm8, %v2538_v27, %v2537_v12  ;;  %v1154_v3 = vmul.f32 %v3713_v14, %v5020_v38  ;;  %v5021_v27 = vld [vmem:[#allocation14_spill] sm:$0xff] }
 0x2ca   :  { %v4230_v58 = vsel %vm1564_vm8, %v5017_v0, %v2005_v30  ;;  %v2253_v10 = vsel %vm1561_vm7, %v2252_v18, %v2251_v19  ;;  %v1164_v23 = vmul.f32 %v3761_v57, %v5021_v27  ;;  %v5022_v19 = vld [vmem:[#allocation15_spill] sm:$0xff] }
 0x2cb   :  { %v4237_v8 = vsel %vm1564_vm8, %v2254_v56, %v2253_v10  ;;  %v1156_v56 = vmul.f32 %v5019_v59, %v5018_v24  ;;  %v1157_v9 = vmul.f32 %v3741_v40, %v5022_v19 }
 0x2e0   :  { %v1271_v47 = vpop.permute.xlu1 %1270 }
 0x2e4   :  { %v1267_v17 = vpop.permute.xlu1 %1266 }
 0x2e8   :  { %v1269_v60 = vpop.permute.xlu1 %1268 }
 0x2ec   :  { %v1287_v35 = vpop.permute.xlu0 %1286  ;;  %v1207_v44 = vpop.permute.xlu1 %1206 }
 0x2ed   :  { %v1316_v7 = vsel %vm1025_vm2, %v1207_v44, %v1271_v47  ;;  %v5023_v44 = vld [vmem:[#allocation13_spill] sm:$0xff] }
 0x2ee   :  { %v1332_v36 = vmul.f32 %v1316_v7, %v3764_v43  ;;  %v1155_v7 = vmul.f32 %v3749_v55, %v5023_v44  ;;  %v1158_v55 = vmul.f32 %v3722_v33, %v3718_v32 }
 0x2f0   :  { %v1273_v61 = vpop.permute.xlu0 %1272  ;;  %v1203_v42 = vpop.permute.xlu1 %1202  ;;  %v1348_v29 = vadd.f32 %v1332_v36, %v1156_v56 }
 0x2f1   :  { %v1314_v20 = vsel %vm1025_vm2, %v1203_v42, %v1267_v17 }
 0x2f2   :  { %v1330_v1 = vmul.f32 %v1314_v20, %v3801_v50 }
 0x2f4   :  { %v1346_v51 = vadd.f32 %v1330_v1, %v1154_v3  ;;  %v1285_v18 = vpop.permute.xlu0 %1284  ;;  %v1283_v37 = vpop.permute.xlu1 %1282 }
 0x2f6   :  { %v1362_v62 = vcombine.low %v1346_v51, %v1348_v29  ;;  %v1500_v10 = vpack.c.bf16 %v1346_v51, %v1346_v51 }
 0x2f8   :  { %v1223_v52 = vpop.permute.xlu0 %1222  ;;  %v1275_v5 = vpop.permute.xlu1 %1274  ;;  %v1578_v42 = vunpack.c.l.b16 %v1500_v10 }
 0x2f9   :  { %v1324_v43 = vsel %vm1025_vm2, %v1223_v52, %v1287_v35  ;;  %v1502_v35 = vpack.c.bf16 %v1348_v29, %v1348_v29 }
 0x2fa   :  { %v1340_v41 = vmul.f32 %v1324_v43, %v3885_v46  ;;  %v2183_v29 = vrot.slane %v1578_v42, 1 }
 0x2fb   :  { %v1580_v24 = vunpack.c.l.b16 %v1502_v35 }
 0x2fc   :  { %v4254_v30 = vadd.f32 %v1340_v41, %v1164_v23  ;;  %v1209_v11 = vpop.permute.xlu0 %1208  ;;  %v4256_v14 = vpop.permute.xlu1 %1278 }
 0x2fd   :  { %v1317_v50 = vsel %vm1025_vm2, %v1209_v11, %v1273_v61  ;;  %v2185_v27 = vrot.slane %v1580_v24, 7  ;;  %v1588_v11 = vrot.slane %v1580_v24, 6 }
 0x2fe   :  { %v1333_v0 = vmul.f32 %v1317_v50, %v3927_v28 }
 0x300   :  { %v1349_v12 = vadd.f32 %v1333_v0, %v1157_v9  ;;  %v1289_v47 = vpop.permute.xlu0 %1288  ;;  %v1205_v17 = vpop.permute.xlu1 %1204 }
 0x301   :  { %v1315_v57 = vsel %vm1025_vm2, %v1205_v17, %v1269_v60  ;;  %v1162_v60 = vmul.f32 %v3784_v16, %v3671_v34 }
 0x302   :  { %v1503_v46 = vpack.c.bf16 %v1349_v12, %v1349_v12  ;;  %v1331_v36 = vmul.f32 %v1315_v57, %v3956_v39  ;;  %v5024_v39 = vld [vmem:[#allocation8_spill] sm:$0xff]  ;;  %v1510_v57 = vpack.c.bf16 %v4254_v30, %v4254_v30 }
 0x303   :  { %v4275_v1 = vrot.slane %v1362_v62, %v5024_v39 }
 0x304   :  { %v1347_v61 = vadd.f32 %v1331_v36, %v1155_v7  ;;  %v4266_v20 = vpop.permute.xlu0 %1290  ;;  %v1219_v40 = vpop.permute.xlu1 %1218  ;;  %v1581_v28 = vunpack.c.l.b16 %v1503_v46  ;;  %v5026_v36 = vld [vmem:[#allocation17_spill] sm:$0xff] }
 0x305   :  { %v1322_v59 = vsel %vm1025_vm2, %v1219_v40, %v1283_v37 }
 0x306   :  { %v1370_v56 = vcombine.low %v1347_v61, %v1349_v12  ;;  %v1501_v38 = vpack.c.bf16 %v1347_v61, %v1347_v61  ;;  %v1338_v3 = vmul.f32 %v1322_v59, %v3979_v45  ;;  %v2187_v23 = vrot.slane %v1581_v28, 6  ;;  %v5025_v45 = vld [vmem:[#allocation32_spill] sm:$0xff]  ;;  %v5027_v61 = vld [vmem:[#allocation27_spill] sm:$0xff] }
 0x307   :  { %v1590_v0 = vrot.slane %v1581_v28, 5  ;;  %v1163_v40 = vmul.f32 %v5027_v61, %v5026_v36  ;;  %v5036_v61 = vld [vmem:[#allocation36_spill] sm:$0xff] }
 0x308   :  { %v4278_v51 = vrot.slane %v1370_v56, %v5024_v39  ;;  %v1579_v52 = vunpack.c.l.b16 %v1501_v38  ;;  %v4280_v43 = vpop.permute.xlu0 %1294  ;;  %v1211_v37 = vpop.permute.xlu1 %1210  ;;  %v1354_v41 = vadd.f32 %v1338_v3, %v1162_v60  ;;  %v1688_v3 = vunpack.c.l.b16 %v1510_v57 }
 0x309   :  { %v1318_v34 = vsel %vm1025_vm2, %v1211_v37, %v1275_v5 }
 0x30a   :  { %v1394_v16 = vcombine.low %v4275_v1, %v4278_v51  ;;  %v1586_v33 = vrot.slane %v1579_v52, 7  ;;  %v2184_v32 = vsel %vm1549_vm3, %v1579_v52, %v2183_v29  ;;  %v1334_v62 = vmul.f32 %v1318_v34, %v5025_v45  ;;  %v5030_v29 = vld [vmem:[#allocation28_spill] sm:$0xff]  ;;  %v5032_v45 = vld [vmem:[#allocation19_spill] sm:$0xff] }
 0x30b   :  { %v2186_v50 = vsel %vm1552_vm4, %v2185_v27, %v2184_v32  ;;  %v1412_v19 = vcombine.low %v1354_v41, %v4254_v30  ;;  %v1508_v9 = vpack.c.bf16 %v1354_v41, %v1354_v41  ;;  %v5028_v30 = vld [vmem:[#allocation20_spill] sm:$0xff]  ;;  %v5031_v32 = vld [vmem:[#allocation22_spill] sm:$0xff] }
 0x30c   :  { %v1587_v10 = vsel %vm1549_vm3, %v1586_v33, %v1578_v42  ;;  %v4290_v12 = vadd.f32 %v1334_v62, %v1158_v55  ;;  %v1221_v5 = vpop.permute.xlu0 %1220  ;;  %v1277_v17 = vpop.permute.xlu1 %1276  ;;  %v2188_v35 = vsel %vm1555_vm5, %v2187_v23, %v2186_v50  ;;  %v5029_v55 = vld [vmem:[#allocation26_spill] sm:$0xff]  ;;  %v1160_v62 = vmul.f32 %v5032_v45, %v5031_v32 }
 0x30d   :  { %v1323_v46 = vsel %vm1025_vm2, %v1221_v5, %v1285_v18  ;;  %v1589_v44 = vsel %vm1552_vm4, %v1588_v11, %v1587_v10  ;;  %v1686_v28 = vunpack.c.l.b16 %v1508_v9  ;;  %v633_v18 = vcombine.high %v5028_v30, %v5028_v30  ;;  %v5033_v11 = vld [vmem:[#allocation34_spill] sm:$0xff] }
 0x30e   :  { %v1504_v7 = vpack.c.bf16 %v4290_v12, %v4290_v12  ;;  %v1339_v42 = vmul.f32 %v1323_v46, %v4000_v6  ;;  %v1591_v24 = vsel %vm1555_vm5, %v1590_v0, %v1589_v44  ;;  %v1165_v52 = vmul.f32 %v5030_v29, %v5029_v55  ;;  %v5034_v9 = vld [vmem:[#allocation30_spill] sm:$0xff]  ;;  %v5035_v0 = vld [vmem:[#allocation23_spill] sm:$0xff] }
 0x30f   :  { %v2259_v33 = vrot.slane %v1686_v28, 1  ;;  %v1166_v10 = vmul.f32 %v5035_v0, %v5034_v9  ;;  %v1696_v30 = vrot.slane %v1688_v3, 6  ;;  %v5037_v55 = vld [vmem:[#allocation35_spill] sm:$0xff]  ;;  %v5041_v0 = vld [vmem:[#allocation25_spill] sm:$0xff] }
 0x310   :  { %v1582_v59 = vunpack.c.l.b16 %v1504_v7  ;;  %v1355_v56 = vadd.f32 %v1339_v42, %v1163_v40  ;;  %v1225_v38 = vpop.permute.xlu0 %1224  ;;  %v1215_v60 = vpop.permute.xlu1 %1214  ;;  %v735_v40 = vcombine.high %v5036_v61, %v5036_v61 }
 0x311   :  { %v1325_v37 = vsel %vm1025_vm2, %v1225_v38, %v1289_v47  ;;  %v1320_v27 = vsel %vm1025_vm2, %v1215_v60, %v4256_v14 }
 0x312   :  { %v1592_v6 = vrot.slane %v1582_v59, 4  ;;  %v2189_v23 = vrot.slane %v1582_v59, 5  ;;  %v1509_v41 = vpack.c.bf16 %v1355_v56, %v1355_v56  ;;  %v1341_v34 = vmul.f32 %v1325_v37, %v4009_v21 }
 0x313   :  { %v1336_v50 = vmul.f32 %v1320_v27, %v5033_v11  ;;  %v2261_v21 = vrot.slane %v1688_v3, 7  ;;  %v5040_v11 = vld [vmem:[#allocation21_spill] sm:$0xff] }
 0x314   :  { %v1687_v5 = vunpack.c.l.b16 %v1509_v41  ;;  %v1357_v57 = vadd.f32 %v1341_v34, %v1165_v52  ;;  %v1227_v47 = vpop.permute.xlu0 %1226  ;;  %v1281_v46 = vpop.permute.xlu1 %1280  ;;  %v4317_v14 = vsel %vm1558_vm6, %v1592_v6, %v1591_v24  ;;  %v4320_v44 = vsel %vm1558_vm6, %v2189_v23, %v2188_v35  ;;  %v5038_v41 = vld [vmem:[#allocation16_spill] sm:$0xff] }
 0x315   :  { %v4322_v7 = vadd.f32 %v1336_v50, %v1160_v62  ;;  %v1326_v36 = vsel %vm1025_vm2, %v1227_v47, %v4266_v20  ;;  %v4334_v52 = vrot.slane %v1412_v19, %v5024_v39  ;;  %v816_v34 = vrot.slane %v633_v18, %v5038_v41  ;;  %v5039_v62 = vld [vmem:[#allocation33_spill] sm:$0xff] }
 0x316   :  { %v1694_v42 = vrot.slane %v1687_v5, 7  ;;  %v2260_v59 = vsel %vm1549_vm3, %v1687_v5, %v2259_v33  ;;  %v1420_v38 = vcombine.low %v1355_v56, %v1357_v57  ;;  %v1511_v60 = vpack.c.bf16 %v1357_v57, %v1357_v57 }
 0x317   :  { %v2262_v24 = vsel %vm1552_vm4, %v2261_v21, %v2260_v59  ;;  %v1378_v35 = vcombine.low %v4290_v12, %v4322_v7  ;;  %v1342_v29 = vmul.f32 %v1326_v36, %v5037_v55  ;;  %v1073_v12 = vrot.slane %v735_v40, %v5038_v41  ;;  %v5043_v59 = vld [vmem:[#allocation31_spill] sm:$0xff]  ;;  %v5045_v55 = vld [vmem:[#allocation37_spill] sm:$0xff] }
 0x318   :  { %v1695_v20 = vsel %vm1549_vm3, %v1694_v42, %v1686_v28  ;;  %v4338_v37 = vrot.slane %v1420_v38, %v5024_v39  ;;  %v1689_v27 = vunpack.c.l.b16 %v1511_v60  ;;  %v1293_v6 = vpop.permute.xlu0 %1292  ;;  %v1213_v56 = vpop.permute.xlu1 %1212  ;;  %v1159_v50 = vmul.f32 %v5040_v11, %v5039_v62  ;;  %v5044_v38 = vld [vmem:[#allocation24_spill] sm:$0xff] }
 0x319   :  { %v1697_v3 = vsel %vm1552_vm4, %v1696_v30, %v1695_v20  ;;  %v4341_v23 = vadd.f32 %v1342_v29, %v1166_v10  ;;  %v1319_v28 = vsel %vm1025_vm2, %v1213_v56, %v1277_v17  ;;  %v682_v18 = vcombine.high %v5041_v0, %v5041_v0  ;;  %v5042_v17 = vld [vmem:[#allocation38_spill] sm:$0xff] }
 0x31a   :  { %v1698_v33 = vrot.slane %v1689_v27, 5  ;;  %v2263_v32 = vrot.slane %v1689_v27, 6  ;;  %v1335_v9 = vmul.f32 %v1319_v28, %v3993_v31  ;;  %v1506_v57 = vpack.c.bf16 %v4322_v7, %v4322_v7 }
 0x31b   :  { %v1512_v45 = vpack.c.bf16 %v4341_v23, %v4341_v23  ;;  %v1161_v21 = vmul.f32 %v816_v34, %v5042_v17  ;;  %v1168_v60 = vmul.f32 %v5044_v38, %v5043_v59  ;;  %v784_v7 = vcombine.high %v5045_v55, %v5045_v55 }
 0x31c   :  { %v1699_v10 = vsel %vm1555_vm5, %v1698_v33, %v1697_v3  ;;  %v2264_v5 = vsel %vm1555_vm5, %v2263_v32, %v2262_v24  ;;  %v1231_v47 = vpop.permute.xlu0 %1230  ;;  %v1217_v36 = vpop.permute.xlu1 %1216  ;;  %v1351_v40 = vadd.f32 %v1335_v9, %v1159_v50  ;;  %v848_v56 = vrot.slane %v682_v18, %v5038_v41 }
 0x31d   :  { %v1690_v61 = vunpack.c.l.b16 %v1512_v45  ;;  %v1328_v42 = vsel %vm1025_vm2, %v1231_v47, %v4280_v43  ;;  %v1321_v31 = vsel %vm1025_vm2, %v1217_v36, %v1281_v46  ;;  %v1584_v3 = vunpack.c.l.b16 %v1506_v57 }
 0x31e   :  { %v1344_v30 = vmul.f32 %v1328_v42, %v3989_v26  ;;  %v1337_v24 = vmul.f32 %v1321_v31, %v1073_v12  ;;  %v1505_v27 = vpack.c.bf16 %v1351_v40, %v1351_v40  ;;  %v872_v28 = vmul.f32 %v816_v34, %v3872_v13  ;;  %v5046_v26 = vld [vmem:[#allocation29_spill] sm:$0xff] }
 0x31f   :  { %v1700_v29 = vrot.slane %v1690_v61, 4  ;;  %v2265_v20 = vrot.slane %v1690_v61, 5  ;;  %v1167_v62 = vmul.f32 %v5046_v26, %v3986_v2  ;;  %v4383_v57 = vrot.slane %v784_v7, %v5038_v41 }
 0x320   :  { %v4369_v33 = vadd.f32 %v1344_v30, %v1168_v60  ;;  %v1353_v43 = vadd.f32 %v1337_v24, %v1161_v21  ;;  %v1297_v32 = vpop.permute.xlu0 %1296  ;;  %v928_v46 = vpop.permute.xlu1 %927  ;;  %v1583_v45 = vunpack.c.l.b16 %v1505_v27  ;;  %v1385_v2 = vrot.slane %v1378_v35, %v5024_v39 }
 0x321   :  { %v4375_v11 = vsel %vm1558_vm6, %v1700_v29, %v1699_v10  ;;  %v4378_v50 = vsel %vm1558_vm6, %v2265_v20, %v2264_v5  ;;  %v1596_v34 = vrot.slane %v1584_v3, 2  ;;  %v1169_v30 = vmul.f32 %v848_v56, %v3997_v63 }
 0x322   :  { %v1428_v9 = vcombine.low %v4341_v23, %v4369_v33  ;;  %v1386_v0 = vcombine.low %v1351_v40, %v1353_v43  ;;  %v1507_v18 = vpack.c.bf16 %v1353_v43, %v1353_v43  ;;  %v1594_v47 = vrot.slane %v1583_v45, 3 }
 0x323   :  { %v2191_v13 = vrot.slane %v1583_v45, 4  ;;  %v2193_v40 = vrot.slane %v1584_v3, 3  ;;  %v1514_v35 = vpack.c.bf16 %v4369_v33, %v4369_v33  ;;  %v4422_v1 = vmul.f32 %v848_v56, %v3939_v48 }
 0x324   :  { %v1393_v10 = vrot.slane %v1386_v0, %v5024_v39  ;;  %v1585_v17 = vunpack.c.l.b16 %v1507_v18  ;;  %v1229_v5 = vpop.permute.xlu0 %1228  ;;  %v992_v21 = vpop.permute.xlu1 %991  ;;  %v1595_v41 = vsel %vm1561_vm7, %v1594_v47, %v4317_v14 }
 0x325   :  { %v1327_v36 = vsel %vm1025_vm2, %v1229_v5, %v1293_v6  ;;  %v1033_v23 = vsel %vm1025_vm2, %v928_v46, %v992_v21  ;;  %v2192_v61 = vsel %vm1561_vm7, %v2191_v13, %v4320_v44  ;;  %v1597_v60 = vsel %vm1564_vm8, %v1596_v34, %v1595_v41  ;;  %v5047_v44 = vld [vmem:[#allocation9_spill] sm:$0xff] }
 0x326   :  { %v1402_v42 = vcombine.low %v1385_v2, %v1393_v10  ;;  %v2195_v31 = vrot.slane %v1585_v17, 2  ;;  %v1343_v59 = vmul.f32 %v1327_v36, %v4013_v15  ;;  %v1129_v38 = vmul.f32 %v1073_v12, %v1033_v23 }
 0x327   :  { %v1598_v6 = vrot.slane %v1585_v17, 1  ;;  %v2194_v14 = vsel %vm1564_vm8, %v2193_v40, %v2192_v61  ;;  %v4411_v63 = vrot.slane %v1394_v16, %v5047_v44  ;;  %v4413_v15 = vunpack.c.l.b16 %v1514_v35 }
 0x328   :  { %v1233_v24 = vpop.permute.xlu0 %1232  ;;  %v438_v55 = vpop.permute.xlu1 %437  ;;  %v4400_v7 = vrot.slane %v1402_v42, %v5047_v44  ;;  %v1359_v29 = vadd.f32 %v1343_v59, %v1167_v62  ;;  %v1145_v20 = vadd.f32 %v1129_v38, %v872_v28  ;;  %v4418_v33 = vsel %vm1567_vm10, %v2195_v31, %v2194_v14 }
 0x329   :  { %v1329_v27 = vsel %vm1025_vm2, %v1233_v24, %v1297_v32  ;;  %1476 = vst.msk [vmem:[%s4921_s12] sm:$0xff] %vm1473_vm9, %v438_v55  ;;  %v1599_v3 = vsel %vm1567_vm10, %v1598_v6, %v1597_v60  ;;  %v5048_v46 = vmov 0.0   ;;  %v4437_v34 = vrot.slane %v1428_v9, %v5024_v39 }
 0x32a   :  { %v1345_v12 = vmul.f32 %v1329_v27, %v4383_v57  ;;  %v1513_v43 = vpack.c.bf16 %v1359_v29, %v1359_v29  ;;  %v1491_v32 = vpack.c.bf16 %v1145_v20, %v1145_v20  ;;  %v449_v28 = vcombine.high %v438_v55, %v5048_v46 }
 0x32b   :  { %v1600_v45 = vpack.c.b16 %v1599_v3, %v1599_v3  ;;  %v1704_v17 = vrot.slane %v4413_v15, 2  ;;  %v456_v21 = vrot.slane %v438_v55, %v5024_v39 }
 0x32c   :  { %v1361_v26 = vadd.f32 %v1345_v12, %v1169_v30  ;;  %v944_v62 = vpop.permute.xlu0 %943  ;;  %v442_v0 = vpop.permute.xlu1 %441  ;;  %v4428_v18 = vunpack.c.l.b16 %v1513_v43  ;;  %v4430_v47 = vunpack.c.l.b16 %v1491_v32  ;;  %v463_v36 = vrot.slane %v449_v28, %v5024_v39 }
 0x32d   :  { %v4433_v13 = vsel %vm1470_vm11, %v1600_v45, 0  ;;  %v464_v2 = vcombine.high %v442_v0, %v5048_v46  ;;  %v471_v10 = vrot.slane %v442_v0, %v5024_v39 }
 0x32e   :  { %v1436_v48 = vcombine.low %v1359_v29, %v1361_v26  ;;  %v1515_v56 = vpack.c.bf16 %v1361_v26, %v1361_v26  ;;  %3100 = vmatpush3.bf16.xpose.msra.mxu1 %v4433_v13  ;;  %v1702_v23 = vrot.slane %v4428_v18, 3  ;;  %v1950_v9 = vrot.slane %v4430_v47, 2 }
 0x32f   :  { %3111 = vmatprep.subr.bf16.mxu1 %v5048_v46  ;;  %v478_v61 = vrot.slane %v464_v2, %v5024_v39  ;;  %v2180_v42 = vrot.slane %v4430_v47, 3  ;;  %v479_v31 = vcombine.low %v456_v21, %v471_v10  ;;  %v480_v59 = vcombine.high %v456_v21, %v471_v10 }
 0x330   :  { %v4449_v41 = vrot.slane %v1436_v48, %v5024_v39  ;;  %v1008_v40 = vpop.permute.xlu0 %1007  ;;  %v4457_v6 = vunpack.c.l.b16 %v1515_v56  ;;  %v1566_v27 = vrot.slane %v4430_v47, 1  ;;  %v1703_v3 = vsel %vm1561_vm7, %v1702_v23, %v4375_v11 }
 0x331   :  { %v495_v30 = vcombine.low %v463_v36, %v478_v61  ;;  %v487_v24 = vrot.slane %v479_v31, %v5047_v44  ;;  %v494_v55 = vrot.slane %v480_v59, %v5047_v44  ;;  %v496_v14 = vcombine.high %v463_v36, %v478_v61 }
 0x332   :  { %v1041_v29 = vsel %vm1025_vm2, %v944_v62, %v1008_v40  ;;  %v4468_v43 = vsel %vm1567_vm10, %v1950_v9, %v4159_v54 }
 0x333   :  { %v503_v20 = vrot.slane %v495_v30, %v5047_v44  ;;  %v510_v32 = vrot.slane %v496_v14, %v5047_v44  ;;  %v511_v28 = vcombine.high %v487_v24, %v5048_v46  ;;  %v512_v45 = vcombine.high %v494_v55, %v5048_v46 }
 0x334   :  { %v440_v12 = vpop.permute.xlu0 %439  ;;  %v1516_v26 = vpack.c.bf16 %v487_v24, %v487_v24  ;;  %v1518_v0 = vpack.c.bf16 %v494_v55, %v494_v55  ;;  %v1137_v2 = vmul.f32 %v4383_v57, %v1041_v29  ;;  %v1706_v30 = vrot.slane %v4457_v6, 1 }
 0x335   :  { %1477 = vst.msk [vmem:[%s4921_s12 + $0x8] sm:$0xff] %vm1473_vm9, %v440_v12  ;;  %v513_v62 = vcombine.high %v503_v20, %v5048_v46  ;;  %v1520_v11 = vpack.c.bf16 %v503_v20, %v503_v20  ;;  %v514_v54 = vcombine.high %v510_v32, %v5048_v46  ;;  %v1517_v48 = vpack.c.bf16 %v511_v28, %v511_v28  ;;  %s3358_s12 = smov 8  }
 0x336   :  { %v1519_v56 = vpack.c.bf16 %v512_v45, %v512_v45  ;;  %v1522_v10 = vpack.c.bf16 %v510_v32, %v510_v32  ;;  %v1787_v36 = vunpack.c.l.b16 %v1516_v26  ;;  %v1789_v23 = vunpack.c.l.b16 %v1518_v0 }
 0x337   :  { %v1521_v21 = vpack.c.bf16 %v513_v62, %v513_v62  ;;  %v4480_v9 = vunpack.c.l.b16 %v1520_v11  ;;  %v1523_v61 = vpack.c.bf16 %v514_v54, %v514_v54  ;;  %v1788_v40 = vunpack.c.l.b16 %v1517_v48 }
 0x338   :  { %v4482_v31 = vunpack.c.l.b16 %v1519_v56  ;;  %v4484_v59 = vunpack.c.l.b16 %v1522_v10  ;;  %v2344_v57 = vrot.slane %v1787_v36, 1  ;;  %v1153_v55 = vadd.f32 %v1137_v2, %v4422_v1  ;;  %v444_v0 = vpop.permute.xlu0 %443 }
 0x339   :  { %v4487_v24 = vunpack.c.l.b16 %v1521_v21  ;;  %v1795_v29 = vrot.slane %v1788_v40, 7  ;;  %v1797_v20 = vrot.slane %v1789_v23, 6  ;;  %v1568_v32 = vsel %vm1567_vm10, %v1566_v27, %v4174_v4 }
 0x33a   :  { %v4493_v28 = vunpack.c.l.b16 %v1523_v61  ;;  %v1801_v45 = vrot.slane %v4480_v9, 4  ;;  %v2345_v26 = vsel %vm1549_vm3, %v1788_v40, %v2344_v57  ;;  %v2346_v62 = vrot.slane %v1789_v23, 7 }
 0x33b   :  { %v1796_v11 = vsel %vm1549_vm3, %v1795_v29, %v1787_v36  ;;  %v1799_v54 = vrot.slane %v4482_v31, 5  ;;  %v1803_v1 = vrot.slane %v4487_v24, 3  ;;  %v1805_v2 = vrot.slane %v4484_v59, 2 }
 0x33c   :  { %v1798_v48 = vsel %vm1552_vm4, %v1797_v20, %v1796_v11  ;;  %v4503_v4 = vsel %vm1552_vm4, %v2346_v62, %v2345_v26  ;;  %v1499_v27 = vpack.c.bf16 %v1153_v55, %v1153_v55  ;;  %v1569_v56 = vpack.c.b16 %v1568_v32, %v1568_v32 }
 0x33d   :  { %v515_v10 = vcombine.high %v440_v12, %v5048_v46  ;;  %v522_v21 = vrot.slane %v440_v12, %v5024_v39  ;;  %v530_v23 = vcombine.high %v444_v0, %v5048_v46  ;;  %v537_v36 = vrot.slane %v444_v0, %v5024_v39 }
 0x33e   :  { %v2348_v61 = vrot.slane %v4482_v31, 6  ;;  %v2350_v40 = vrot.slane %v4480_v9, 5  ;;  %v4511_v57 = vunpack.c.l.b16 %v1499_v27  ;;  %3102 = vmatmul.mubr.msk.bf16.vlgmr.msra.gmra.mrb[0].mxu1 %vm1470_vm11, %v1569_v56  ;;  %v1705_v55 = vsel %vm1564_vm8, %v1704_v17, %v1703_v3 }
 0x33f   :  { %v529_v29 = vrot.slane %v515_v10, %v5024_v39  ;;  %v544_v12 = vrot.slane %v530_v23, %v5024_v39  ;;  %v545_v20 = vcombine.low %v522_v21, %v537_v36  ;;  %v546_v32 = vcombine.high %v522_v21, %v537_v36  ;;  %3113 = vmatprep.mubr.msk.bf16.mxu1 %vm3346_vm1, %v5048_v46 }
 0x340   :  { %v1675_v0 = vrot.slane %v4511_v57, 1  ;;  %v1800_v11 = vsel %vm1555_vm5, %v1799_v54, %v1798_v48  ;;  %v2008_v39 = vrot.slane %v4511_v57, 2  ;;  %v1707_v21 = vsel %vm1567_vm10, %v1706_v30, %v1705_v55 }
 0x341   :  { %v553_v27 = vrot.slane %v545_v20, %v5047_v44  ;;  %v560_v17 = vrot.slane %v546_v32, %v5047_v44  ;;  %v561_v3 = vcombine.low %v529_v29, %v544_v12  ;;  %v562_v56 = vcombine.high %v529_v29, %v544_v12 }
 0x342   :  { %v1807_v23 = vrot.slane %v4493_v28, 1  ;;  %v4538_v12 = vsel %vm1567_vm10, %v1675_v0, %v4225_v22  ;;  %v1802_v22 = vsel %vm1558_vm6, %v1801_v45, %v1800_v11  ;;  %v1708_v35 = vpack.c.b16 %v1707_v21, %v1707_v21 }
 0x343   :  { %v569_v36 = vrot.slane %v561_v3, %v5047_v44  ;;  %v576_v16 = vrot.slane %v562_v56, %v5047_v44  ;;  %v577_v54 = vcombine.high %v553_v27, %v5048_v46  ;;  %v578_v48 = vcombine.high %v560_v17, %v5048_v46 }
 0x344   :  { %v1524_v32 = vpack.c.bf16 %v553_v27, %v553_v27  ;;  %v1526_v29 = vpack.c.bf16 %v560_v17, %v560_v17 }
 0x345   :  { %v579_v30 = vcombine.high %v569_v36, %v5048_v46  ;;  %v580_v55 = vcombine.high %v576_v16, %v5048_v46  ;;  %v1525_v51 = vpack.c.bf16 %v577_v54, %v577_v54  ;;  %v1527_v3 = vpack.c.bf16 %v578_v48, %v578_v48 }
 0x346   :  { %v1528_v60 = vpack.c.bf16 %v569_v36, %v569_v36  ;;  %v1530_v56 = vpack.c.bf16 %v576_v16, %v576_v16  ;;  %v1865_v19 = vunpack.c.l.b16 %v1524_v32  ;;  %v1867_v38 = vunpack.c.l.b16 %v1526_v29 }
 0x347   :  { %v1529_v14 = vpack.c.bf16 %v579_v30, %v579_v30  ;;  %v1531_v62 = vpack.c.bf16 %v580_v55, %v580_v55  ;;  %v1866_v5 = vunpack.c.l.b16 %v1525_v51  ;;  %v1868_v20 = vunpack.c.l.b16 %v1527_v3 }
 0x348   :  { %v1869_v27 = vunpack.c.l.b16 %v1528_v60  ;;  %v4542_v17 = vunpack.c.l.b16 %v1530_v56  ;;  %v2405_v26 = vrot.slane %v1865_v19, 1  ;;  %v1677_v54 = vpack.c.b16 %v4538_v12, %v4538_v12 }
 0x349   :  { %v1870_v0 = vunpack.c.l.b16 %v1529_v14  ;;  %v1873_v10 = vrot.slane %v1866_v5, 7  ;;  %v1872_v16 = vunpack.c.l.b16 %v1531_v62  ;;  %v1875_v36 = vrot.slane %v1867_v38, 6 }
 0x34a   :  { %v2406_v48 = vsel %vm1549_vm3, %v1866_v5, %v2405_v26  ;;  %v2407_v32 = vrot.slane %v1867_v38, 7  ;;  %v1877_v60 = vrot.slane %v1868_v20, 5  ;;  %v1879_v29 = vrot.slane %v1869_v27, 4 }
 0x34b   :  { %v1874_v51 = vsel %vm1549_vm3, %v1873_v10, %v1865_v19  ;;  %v1883_v30 = vrot.slane %v4542_v17, 2  ;;  %v1881_v14 = vrot.slane %v1870_v0, 3  ;;  %v2409_v21 = vrot.slane %v1868_v20, 6 }
 0x34c   :  { %v1876_v45 = vsel %vm1552_vm4, %v1875_v36, %v1874_v51  ;;  %v2408_v11 = vsel %vm1552_vm4, %v2407_v32, %v2406_v48  ;;  %v2411_v55 = vrot.slane %v1869_v27, 5  ;;  %v4553_v12 = vsel %vm1470_vm11, %v1708_v35, 0 }
 0x34d   :  { %v1804_v5 = vsel %vm1561_vm7, %v1803_v1, %v1802_v22  ;;  %v1878_v19 = vsel %vm1555_vm5, %v1877_v60, %v1876_v45  ;;  %3106 = vmatpush3.bf16.xpose.msra.mxu0 %v4553_v12  ;;  %v4566_v62 = vsel %vm1567_vm10, %v2008_v39, %v4230_v58  ;;  %v4572_v35 = vsel %vm1567_vm10, %v2180_v42, %v4183_v49 }
 0x34e   :  { %v1806_v38 = vsel %vm1564_vm8, %v1805_v2, %v1804_v5  ;;  %v1880_v26 = vsel %vm1558_vm6, %v1879_v29, %v1878_v19  ;;  %v2413_v1 = vrot.slane %v1870_v0, 4  ;;  %3117 = vmatprep.subr.bf16.mxu0 %v5048_v46  ;;  %v1885_v2 = vrot.slane %v1872_v16, 1 }
 0x34f   :  { %v1808_v10 = vsel %vm1567_vm10, %v1807_v23, %v1806_v38  ;;  %v1882_v20 = vsel %vm1561_vm7, %v1881_v14, %v1880_v26  ;;  %v2349_v58 = vsel %vm1555_vm5, %v2348_v61, %v4503_v4  ;;  %v2356_v39 = vrot.slane %v4493_v28, 2 }
 0x350   :  { %v1809_v3 = vpack.c.b16 %v1808_v10, %v1808_v10  ;;  %v1884_v56 = vsel %vm1564_vm8, %v1883_v30, %v1882_v20  ;;  %v2351_v42 = vsel %vm1558_vm6, %v2350_v40, %v2349_v58  ;;  %v5049_v23 = vrot.slane %v4428_v18, 4 }
 0x351   :  { %v1886_v49 = vsel %vm1567_vm10, %v1885_v2, %v1884_v56  ;;  %v5050_v22 = vrot.slane %v4511_v57, 3  ;;  %v5051_v61 = vrot.slane %v4487_v24, 4  ;;  %v5052_v40 = vrot.slane %v4413_v15, 3 }
 0x352   :  { %v2268_v27 = vsel %vm1561_vm7, %v5049_v23, %v4378_v50  ;;  %v4598_v4 = vsel %vm1813_vm12, %v1809_v3, 0  ;;  %v1887_v28 = vpack.c.b16 %v1886_v49, %v1886_v49  ;;  %v5053_v50 = vrot.slane %v4484_v59, 3 }
 0x353   :  { %v4595_v31 = vsel %vm1567_vm10, %v5050_v22, %v4237_v8  ;;  %v2353_v9 = vsel %vm1561_vm7, %v5051_v61, %v2351_v42  ;;  %v2270_v18 = vsel %vm1564_vm8, %v5052_v40, %v2268_v27  ;;  %3112 = vmatpush3.bf16.msra.mxu1 %v4598_v4  ;;  %v5054_v8 = vrot.slane %v4457_v6, 2 }
 0x354   :  { %v2355_v0 = vsel %vm1564_vm8, %v5053_v50, %v2353_v9  ;;  %v2410_v48 = vsel %vm1555_vm5, %v2409_v21, %v2408_v11  ;;  %v2415_v24 = vrot.slane %v4542_v17, 3  ;;  %v4618_v32 = vsel %vm1813_vm12, %v1887_v28, 0  ;;  %3123 = vmatprep.subr.bf16.mxu1 %v5048_v46  ;;  %3108 = vmatmul.mubr.msk.bf16.vlgmr.msra.gmra.mrb[4].mxu0 %vm1470_vm11, %v1677_v54 }
 0x355   :  { %v4613_v36 = vsel %vm1567_vm10, %v5054_v8, %v2270_v18  ;;  %v2357_v15 = vsel %vm1567_vm10, %v2356_v39, %v2355_v0  ;;  %v2412_v59 = vsel %vm1558_vm6, %v2411_v55, %v2410_v48  ;;  %v2417_v60 = vrot.slane %v1872_v16, 2  ;;  %3118 = vmatpush3.bf16.msra.mxu0 %v4618_v32  ;;  %3119 = vmatprep.mubr.msk.bf16.mxu0 %vm3346_vm1, %v5048_v46 }
 0x356   :  { %v2358_v51 = vpack.c.b16 %v2357_v15, %v2357_v15  ;;  %v2414_v6 = vsel %vm1561_vm7, %v2413_v1, %v2412_v59  ;;  %v5055_v29 = vrot.slane %v4430_v47, 4  ;;  %v5056_v54 = vrot.slane %v4511_v57, 4  ;;  %3129 = vmatprep.subr.bf16.mxu0 %v5048_v46 }
 0x357   :  { %v2416_v30 = vsel %vm1564_vm8, %v2415_v24, %v2414_v6  ;;  %v5057_v16 = vcombine.low %v4334_v52, %v4338_v37  ;;  %v5058_v57 = vcombine.low %v4437_v34, %v4449_v41  ;;  %v5059_v19 = vlaneseq  ;;  %v5060_v37 = vld [vmem:[#allocation7_spill] sm:$0xff] }
 0x358   :  { %v4629_v17 = vsel %vm1567_vm10, %v5055_v29, %v4202_v25  ;;  %v4639_v45 = vsel %vm1567_vm10, %v5056_v54, %v4240_v53  ;;  %v4643_v47 = vsel %vm1813_vm12, %v2358_v51, 0  ;;  %v2418_v25 = vsel %vm1567_vm10, %v2417_v60, %v2416_v30 }
 0x359   :  { %v4650_v14 = vrot.slane %v5057_v16, %v5047_v44  ;;  %v4656_v11 = vrot.slane %v5058_v57, %v5047_v44  ;;  %v2419_v53 = vpack.c.b16 %v2418_v25, %v2418_v25  ;;  %v1481_v52 = vand.u32 127, %v5059_v19 }
 0x35a   :  { %v3357_v26 = vmov -1e+09   ;;  %v1952_v50 = vpack.c.b16 %v4468_v43, %v4468_v43  ;;  %v2010_v43 = vpack.c.b16 %v4566_v62, %v4566_v62 }
 0x35b   :  { %v1461_v21 = vcombine.high %v4650_v14, %v4656_v11  ;;  %v1460_v55 = vcombine.low %v4650_v14, %v4656_v11  ;;  %v4663_v5 = vsel %vm1813_vm12, %v2419_v53, 0  ;;  %vm1482_vm13 = vcmp.ge.s32.totalorder %v5060_v37, %v1481_v52 }
 0x35c   :  { %v4667_v1 = vsel %vm1482_vm13, 0.0, %v3357_v26 }
 0x411   :  { %v1641_v38 = vpop.f32.mrb[0].mxu1 }
 0x412   :  { %v1755_v44 = vmul.f32 0.35355338, %v1641_v38  ;;  %v3103_v34 = vpop.f32.mrb[1].mxu1 }
 0x413   :  { %v1644_v41 = vpop.f32.mrb[2].mxu1 }
 0x414   :  { %v3104_v10 = vpop.f32.mrb[3].mxu1  ;;  %v1757_v20 = vadd.f32 %v1755_v44, %v4667_v1  ;;  %v2197_v41 = vpack.c.b16 %v4418_v33, %v4418_v33  ;;  %v2182_v33 = vpack.c.b16 %v4572_v35, %v4572_v35 }
 0x416   :  { %v1759_v2 = vsel %vm1470_vm11, %v1757_v20, -inf }
 0x417   :  { %1760 = vmax.xlane.f32.xlu1 %v1759_v2  ;;  %v2202_v2 = vsel %vm1470_vm11, %v2197_v41, 0 }
 0x427   :  { %v1749_v3 = vpop.f32.mrb[4].mxu0 }
 0x428   :  { %v1756_v56 = vmul.f32 0.35355338, %v1749_v3  ;;  %v3109_v58 = vpop.f32.mrb[5].mxu0 }
 0x429   :  { %v1752_v39 = vpop.f32.mrb[6].mxu0 }
 0x42a   :  { %v3110_v49 = vpop.f32.mrb[7].mxu0  ;;  %v1758_v42 = vadd.f32 %v1756_v56, %v4667_v1  ;;  %v2273_v39 = vpack.c.b16 %v4613_v36, %v4613_v36 }
 0x42c   :  { %v1762_v23 = vsel %vm1470_vm11, %v1758_v42, -inf  ;;  %v2278_v35 = vsel %vm1470_vm11, %v2273_v39, 0 }
 0x42d   :  { %1763 = vmax.xlane.f32.xlu0 %v1762_v23  ;;  %v2258_v23 = vpack.c.b16 %v4595_v31, %v4595_v31 }
 0x4a4   :  { %v1761_v27 = vpop.xlane.xlu1 %1760 }
 0x4a5   :  { %v1765_v22 = vsub.f32 %v1757_v20, %v1761_v27 }
 0x4a7   :  { %v1767_v28 = vmul.f32 1.442695, %v1765_v22 }
 0x4a9   :  { %3275 = vpow2.f32 %v1767_v28 }
 0x4b3   :  { %v4673_v61 = vpop.eup %3275 }
 0x4b4   :  { %v1777_v9 = vpack.c.bf16 %v4673_v61, %v4673_v61 }
 0x4b6   :  { %3114 = vmatmul.mubr.msk.bf16.vlgmr.msra.gmra.mrb[4].mxu1 %vm1470_vm11, %v1777_v9 }
 0x4b7   :  { %3124 = vmatpush3.bf16.xpose.msra.mxu1 %v4433_v13  ;;  %3125 = vmatprep.mubr.msk.bf16.mxu1 %vm3346_vm1, %v5048_v46 }
 0x4b8   :  { %3135 = vmatprep.subr.bf16.mxu1 %v5048_v46 }
 0x4ba   :  { %v1764_v40 = vpop.xlane.xlu0 %1763 }
 0x4bb   :  { %v1766_v18 = vsub.f32 %v1758_v42, %v1764_v40 }
 0x4bd   :  { %v1769_v0 = vmul.f32 1.442695, %v1766_v18 }
 0x4be   :  { %3126 = vmatmul.mubr.msk.bf16.vlgmr.msra.gmra.mrb[8].mxu1 %vm1470_vm11, %v1952_v50 }
 0x4bf   :  { %3136 = vmatpush3.bf16.msra.mxu1 %v4598_v4  ;;  %3137 = vmatprep.mubr.msk.bf16.mxu1 %vm3346_vm1, %v5048_v46  ;;  %3277 = vpow2.f32 %v1769_v0 }
 0x4c0   :  { %3147 = vmatprep.subr.bf16.mxu1 %v5048_v46 }
 0x4c9   :  { %v4689_v13 = vpop.eup %3277 }
 0x4ca   :  { %v1778_v8 = vpack.c.bf16 %v4689_v13, %v4689_v13 }
 0x4cc   :  { %3120 = vmatmul.mubr.msk.bf16.vlgmr.msra.gmra.mrb[8].mxu0 %vm1470_vm11, %v1778_v8 }
 0x4cd   :  { %3130 = vmatpush3.bf16.xpose.msra.mxu0 %v4553_v12  ;;  %3131 = vmatprep.mubr.msk.bf16.mxu0 %vm3346_vm1, %v5048_v46 }
 0x4ce   :  { %3141 = vmatprep.subr.bf16.mxu0 %v5048_v46 }
 0x4d4   :  { %3132 = vmatmul.mubr.msk.bf16.vlgmr.msra.gmra.mrb[12].mxu0 %vm1470_vm11, %v2010_v43 }
 0x4d5   :  { %3142 = vmatpush3.bf16.msra.mxu0 %v4618_v32  ;;  %3143 = vmatprep.mubr.msk.bf16.mxu0 %vm3346_vm1, %v5048_v46 }
 0x4d6   :  { %3153 = vmatprep.subr.bf16.mxu0 %v5048_v46 }
 0x589   :  { %v4705_v4 = vpop.f32.mrb[4].mxu1 }
 0x58a   :  { %v3115_v12 = vpop.f32.mrb[5].mxu1 }
 0x58b   :  { %v1854_v48 = vpop.f32.mrb[6].mxu1 }
 0x58c   :  { %v3116_v24 = vpop.f32.mrb[7].mxu1 }
 0x591   :  { %v1990_v15 = vpop.f32.mrb[8].mxu1 }
 0x592   :  { %v2054_v59 = vmul.f32 0.35355338, %v1990_v15  ;;  %v3127_v51 = vpop.f32.mrb[9].mxu1 }
 0x593   :  { %v1993_v6 = vpop.f32.mrb[10].mxu1 }
 0x594   :  { %v3128_v60 = vpop.f32.mrb[11].mxu1  ;;  %v2056_v62 = vadd.f32 %v2054_v59, %v4667_v1 }
 0x596   :  { %v2058_v29 = vsel %vm1470_vm11, %v2056_v62, -inf }
 0x597   :  { %2059 = vmax.xlane.f32.xlu0 %v2058_v29 }
 0x59f   :  { %v4709_v32 = vpop.f32.mrb[8].mxu0 }
 0x5a0   :  { %v3121_v30 = vpop.f32.mrb[9].mxu0 }
 0x5a1   :  { %v1931_v54 = vpop.f32.mrb[10].mxu0 }
 0x5a2   :  { %v3122_v25 = vpop.f32.mrb[11].mxu0 }
 0x5a7   :  { %v2048_v16 = vpop.f32.mrb[12].mxu0 }
 0x5a8   :  { %v2055_v57 = vmul.f32 0.35355338, %v2048_v16  ;;  %v3133_v53 = vpop.f32.mrb[13].mxu0 }
 0x5a9   :  { %v2051_v19 = vpop.f32.mrb[14].mxu0 }
 0x5aa   :  { %v3134_v52 = vpop.f32.mrb[15].mxu0  ;;  %v2057_v37 = vadd.f32 %v2055_v57, %v4667_v1 }
 0x5ab   :  { %v2484_v52 = vpack.c.b16 %v4629_v17, %v4629_v17  ;;  %v2542_v17 = vpack.c.b16 %v4639_v45, %v4639_v45 }
 0x5ac   :  { %v2061_v38 = vsel %vm1470_vm11, %v2057_v37, -inf }
 0x5ad   :  { %2062 = vmax.xlane.f32.xlu1 %v2061_v38 }
 0x624   :  { %v2060_v26 = vpop.xlane.xlu0 %2059 }
 0x625   :  { %v2064_v44 = vsub.f32 %v2056_v62, %v2060_v26 }
 0x627   :  { %v2066_v34 = vmul.f32 1.442695, %v2064_v44 }
 0x629   :  { %3279 = vpow2.f32 %v2066_v34 }
 0x633   :  { %v4715_v10 = vpop.eup %3279 }
 0x634   :  { %v2076_v20 = vpack.c.bf16 %v4715_v10, %v4715_v10 }
 0x636   :  { %3138 = vmatmul.mubr.msk.bf16.vlgmr.msra.gmra.mrb[12].mxu1 %vm1470_vm11, %v2076_v20 }
 0x637   :  { %3148 = vmatpush3.bf16.xpose.msra.mxu1 %v2202_v2  ;;  %3149 = vmatprep.mubr.msk.bf16.mxu1 %vm3346_vm1, %v5048_v46 }
 0x638   :  { %3159 = vmatprep.subr.bf16.mxu1 %v5048_v46 }
 0x63a   :  { %v2063_v3 = vpop.xlane.xlu1 %2062 }
 0x63b   :  { %v2065_v56 = vsub.f32 %v2057_v37, %v2063_v3 }
 0x63d   :  { %v2068_v58 = vmul.f32 1.442695, %v2065_v56 }
 0x63e   :  { %3150 = vmatmul.mubr.msk.bf16.vlgmr.msra.gmra.mrb[16].mxu1 %vm1470_vm11, %v2182_v33 }
 0x63f   :  { %3160 = vmatpush3.bf16.msra.mxu1 %v4643_v47  ;;  %3161 = vmatprep.mubr.msk.bf16.mxu1 %vm3346_vm1, %v5048_v46  ;;  %3281 = vpow2.f32 %v2068_v58 }
 0x640   :  { %3171 = vmatprep.subr.bf16.mxu1 %v5048_v46 }
 0x649   :  { %v4733_v49 = vpop.eup %3281 }
 0x64a   :  { %v2077_v42 = vpack.c.bf16 %v4733_v49, %v4733_v49 }
 0x64c   :  { %3144 = vmatmul.mubr.msk.bf16.vlgmr.msra.gmra.mrb[16].mxu0 %vm1470_vm11, %v2077_v42 }
 0x64d   :  { %3154 = vmatpush3.bf16.xpose.msra.mxu0 %v2278_v35  ;;  %3155 = vmatprep.mubr.msk.bf16.mxu0 %vm3346_vm1, %v5048_v46 }
 0x64e   :  { %3165 = vmatprep.subr.bf16.mxu0 %v5048_v46 }
 0x654   :  { %3156 = vmatmul.mubr.msk.bf16.vlgmr.msra.gmra.mrb[20].mxu0 %vm1470_vm11, %v2258_v23 }
 0x655   :  { %3166 = vmatpush3.bf16.msra.mxu0 %v4663_v5  ;;  %3167 = vmatprep.mubr.msk.bf16.mxu0 %vm3346_vm1, %v5048_v46 }
 0x656   :  { %3177 = vmatprep.subr.bf16.mxu0 %v5048_v46 }
 0x709   :  { %v4749_v36 = vpop.f32.mrb[12].mxu1 }
 0x70a   :  { %v3139_v27 = vpop.f32.mrb[13].mxu1 }
 0x70b   :  { %v2118_v22 = vpop.f32.mrb[14].mxu1 }
 0x70c   :  { %v3140_v28 = vpop.f32.mrb[15].mxu1 }
 0x711   :  { %v2238_v9 = vpop.f32.mrb[16].mxu1 }
 0x712   :  { %v2320_v40 = vmul.f32 0.35355338, %v2238_v9  ;;  %v3151_v18 = vpop.f32.mrb[17].mxu1 }
 0x713   :  { %v2241_v50 = vpop.f32.mrb[18].mxu1 }
 0x714   :  { %v3152_v0 = vpop.f32.mrb[19].mxu1  ;;  %v2322_v31 = vadd.f32 %v2320_v40, %v4667_v1 }
 0x716   :  { %v2324_v8 = vsel %vm1470_vm11, %v2322_v31, -inf }
 0x717   :  { %2325 = vmax.xlane.f32.xlu0 %v2324_v8 }
 0x71f   :  { %v4753_v43 = vpop.f32.mrb[16].mxu0 }
 0x720   :  { %v3145_v12 = vpop.f32.mrb[17].mxu0 }
 0x721   :  { %v2161_v48 = vpop.f32.mrb[18].mxu0 }
 0x722   :  { %v3146_v24 = vpop.f32.mrb[19].mxu0 }
 0x727   :  { %v2314_v15 = vpop.f32.mrb[20].mxu0 }
 0x728   :  { %v2321_v59 = vmul.f32 0.35355338, %v2314_v15  ;;  %v3157_v51 = vpop.f32.mrb[21].mxu0 }
 0x729   :  { %v2317_v6 = vpop.f32.mrb[22].mxu0 }
 0x72a   :  { %v3158_v60 = vpop.f32.mrb[23].mxu0  ;;  %v2323_v62 = vadd.f32 %v2321_v59, %v4667_v1 }
 0x72c   :  { %v2327_v29 = vsel %vm1470_vm11, %v2323_v62, -inf }
 0x72d   :  { %2328 = vmax.xlane.f32.xlu1 %v2327_v29 }
 0x7a4   :  { %v2326_v30 = vpop.xlane.xlu0 %2325 }
 0x7a5   :  { %v2330_v54 = vsub.f32 %v2322_v31, %v2326_v30 }
 0x7a7   :  { %v2332_v25 = vmul.f32 1.442695, %v2330_v54 }
 0x7a9   :  { %3283 = vpow2.f32 %v2332_v25 }
 0x7b3   :  { %v3284_v16 = vpop.eup %3283 }
 0x7b4   :  { %v2342_v57 = vpack.c.bf16 %v3284_v16, %v3284_v16  ;;  %v2336_v39 = vsel %vm1470_vm11, %v3284_v16, 0.0 }
 0x7b6   :  { %3162 = vmatmul.mubr.msk.bf16.vlgmr.msra.gmra.mrb[20].mxu1 %vm1470_vm11, %v2342_v57 }
 0x7b7   :  { %3172 = vmatpush3.bf16.xpose.msra.mxu1 %v2202_v2  ;;  %3173 = vmatprep.mubr.msk.bf16.mxu1 %vm3346_vm1, %v5048_v46 }
 0x7b8   :  { %3183 = vmatprep.subr.bf16.mxu1 %v5048_v46 }
 0x7ba   :  { %v2329_v53 = vpop.xlane.xlu1 %2328 }
 0x7bb   :  { %v2331_v19 = vsub.f32 %v2323_v62, %v2329_v53 }
 0x7bd   :  { %v2334_v37 = vmul.f32 1.442695, %v2331_v19 }
 0x7be   :  { %3174 = vmatmul.mubr.msk.bf16.vlgmr.msra.gmra.mrb[24].mxu1 %vm1470_vm11, %v2484_v52 }
 0x7bf   :  { %3184 = vmatpush3.bf16.msra.mxu1 %v4643_v47  ;;  %3185 = vmatprep.mubr.msk.bf16.mxu1 %vm3346_vm1, %v5048_v46  ;;  %3285 = vpow2.f32 %v2334_v37 }
 0x7c0   :  { %3195 = vmatprep.subr.bf16.mxu1 %v5048_v46 }
 0x7c9   :  { %v3286_v38 = vpop.eup %3285 }
 0x7ca   :  { %v2343_v26 = vpack.c.bf16 %v3286_v38, %v3286_v38  ;;  %v2339_v31 = vsel %vm1470_vm11, %v3286_v38, 0.0 }
 0x7cc   :  { %3168 = vmatmul.mubr.msk.bf16.vlgmr.msra.gmra.mrb[24].mxu0 %vm1470_vm11, %v2343_v26  ;;  %v1774_v26 = vsel %vm1470_vm11, %v4689_v13, 0.0 }
 0x7cd   :  { %3178 = vmatpush3.bf16.xpose.msra.mxu0 %v2278_v35  ;;  %3179 = vmatprep.mubr.msk.bf16.mxu0 %vm3346_vm1, %v5048_v46 }
 0x7ce   :  { %3189 = vmatprep.subr.bf16.mxu0 %v5048_v46 }
 0x7d4   :  { %3180 = vmatmul.mubr.msk.bf16.vlgmr.msra.gmra.mrb[28].mxu0 %vm1470_vm11, %v2542_v17 }
 0x7d5   :  { %3190 = vmatpush3.bf16.msra.mxu0 %v4663_v5  ;;  %3191 = vmatprep.mubr.msk.bf16.mxu0 %vm3346_vm1, %v5048_v46  ;;  %v2070_v5 = vsel %vm1470_vm11, %v4715_v10, 0.0  ;;  %v2073_v10 = vsel %vm1470_vm11, %v4733_v49, 0.0 }
 0x7d6   :  { %3203 = vmatprep.subr.bf16.mxu0 %v5048_v46 }
 0x889   :  { %v4779_v47 = vpop.f32.mrb[20].mxu1 }
 0x88a   :  { %v3163_v44 = vpop.f32.mrb[21].mxu1 }
 0x88b   :  { %v2402_v34 = vpop.f32.mrb[22].mxu1 }
 0x88c   :  { %v3164_v41 = vpop.f32.mrb[23].mxu1 }
 0x891   :  { %v2522_v20 = vpop.f32.mrb[24].mxu1 }
 0x892   :  { %v2586_v2 = vmul.f32 0.35355338, %v2522_v20  ;;  %v3175_v3 = vpop.f32.mrb[25].mxu1 }
 0x893   :  { %v2525_v56 = vpop.f32.mrb[26].mxu1  ;;  %v3264_v3 = vld [vmem:[%s4913_s4 + $0x8] sm:$0xff]  }
 0x894   :  { %v3176_v33 = vpop.f32.mrb[27].mxu1  ;;  %v2588_v45 = vadd.f32 %v2586_v2, %v4667_v1 }
 0x896   :  { %v2590_v58 = vsel %vm1470_vm11, %v2588_v45, -inf }
 0x897   :  { %2591 = vmax.xlane.f32.xlu0 %v2590_v58 }
 0x89b   :  { %2071 = vadd.xlane.f32.xlu0 %v2070_v5 }
 0x89f   :  { %2337 = vadd.xlane.f32.xlu0 %v2336_v39  ;;  %v2460_v42 = vpop.f32.mrb[24].mxu0 }
 0x8a0   :  { %v3169_v35 = vpop.f32.mrb[25].mxu0 }
 0x8a1   :  { %v2463_v23 = vpop.f32.mrb[26].mxu0 }
 0x8a2   :  { %v3170_v27 = vpop.f32.mrb[27].mxu0 }
 0x8a7   :  { %v2580_v22 = vpop.f32.mrb[28].mxu0 }
 0x8a8   :  { %v2587_v28 = vmul.f32 0.35355338, %v2580_v22  ;;  %v3181_v9 = vpop.f32.mrb[29].mxu0 }
 0x8a9   :  { %v2583_v40 = vpop.f32.mrb[30].mxu0 }
 0x8aa   :  { %v3182_v18 = vpop.f32.mrb[31].mxu0  ;;  %v2589_v50 = vadd.f32 %v2587_v28, %v4667_v1  ;;  %v1771_v1 = vsel %vm1470_vm11, %v4673_v61, 0.0 }
 0x8ac   :  { %v2593_v0 = vsel %vm1470_vm11, %v2589_v50, -inf }
 0x8ad   :  { %2594 = vmax.xlane.f32.xlu1 %v2593_v0 }
 0x8b1   :  { %2074 = vadd.xlane.f32.xlu1 %v2073_v10 }
 0x8b5   :  { %2340 = vadd.xlane.f32.xlu1 %v2339_v31 }
 0x924   :  { %v2592_v8 = vpop.xlane.xlu0 %2591 }
 0x925   :  { %v2596_v12 = vsub.f32 %v2588_v45, %v2592_v8 }
 0x927   :  { %v2598_v48 = vmul.f32 1.442695, %v2596_v12 }
 0x928   :  { %v2072_v49 = vpop.xlane.xlu0 %2071 }
 0x929   :  { %3287 = vpow2.f32 %v2598_v48 }
 0x92a   :  { %3289 = vrcp.f32 %v2072_v49 }
 0x92c   :  { %v2338_v62 = vpop.xlane.xlu0 %2337 }
 0x933   :  { %v3288_v24 = vpop.eup %3287 }
 0x934   :  { %v2602_v15 = vsel %vm1470_vm11, %v3288_v24, 0.0  ;;  %v2608_v59 = vpack.c.bf16 %v3288_v24, %v3288_v24  ;;  %v3290_v54 = vpop.eup %3289 }
 0x935   :  { %2603 = vadd.xlane.f32.xlu0 %v2602_v15  ;;  %v2166_v19 = vmul.f32 %v3290_v54, %v4749_v36 }
 0x936   :  { %3186 = vmatmul.mubr.msk.bf16.vlgmr.msra.gmra.mrb[28].mxu1 %vm1470_vm11, %v2608_v59 }
 0x937   :  { %3199 = vmatprep.mubr.msk.bf16.mxu1 %vm3346_vm1, %v5048_v46 }
 0x939   :  { %1772 = vadd.xlane.f32.xlu0 %v1771_v1 }
 0x93a   :  { %v2595_v51 = vpop.xlane.xlu1 %2594 }
 0x93b   :  { %v2597_v6 = vsub.f32 %v2589_v50, %v2595_v51 }
 0x93d   :  { %v2600_v60 = vmul.f32 1.442695, %v2597_v6 }
 0x93e   :  { %v2075_v29 = vpop.xlane.xlu1 %2074 }
 0x93f   :  { %3291 = vpow2.f32 %v2600_v60 }
 0x940   :  { %3293 = vrcp.f32 %v2075_v29 }
 0x941   :  { %3295 = vrcp.f32 %v2338_v62  ;;  %v3319_v62 = vld [vmem:[%s4909_s0] sm:$0xff] }
 0x942   :  { %v2341_v30 = vpop.xlane.xlu1 %2340 }
 0x943   :  { %3297 = vrcp.f32 %v2341_v30 }
 0x949   :  { %v3292_v25 = vpop.eup %3291 }
 0x94a   :  { %v3294_v16 = vpop.eup %3293  ;;  %v2605_v57 = vsel %vm1470_vm11, %v3292_v25, 0.0  ;;  %v2609_v53 = vpack.c.bf16 %v3292_v25, %v3292_v25  ;;  %v3320_v25 = vld [vmem:[%s4909_s0 + $0x8] sm:$0xff] }
 0x94b   :  { %v3296_v61 = vpop.eup %3295  ;;  %2606 = vadd.xlane.f32.xlu1 %v2605_v57  ;;  %v2167_v52 = vmul.f32 %v3294_v16, %v4753_v43  ;;  %v3263_v43 = vld [vmem:[%s4913_s4] sm:$0xff]  }
 0x94c   :  { %3192 = vmatmul.mubr.msk.bf16.vlgmr.msra.gmra.mrb[32].mxu0 %vm1470_vm11, %v2609_v53  ;;  %v2468_v17 = vmul.f32 %v3296_v61, %v4779_v47  ;;  %3196 = vmatpush3.bf16.msra.mxu1 %v3263_v43 }
 0x94d   :  { %v3298_v37 = vpop.eup %3297  ;;  %v3242_v38 = vpack.i.bf16 %v2167_v52, %v2166_v19  ;;  %3207 = vmatprep.mubr.msk.bf16.mxu0 %vm3346_vm1, %v5048_v46  ;;  %3197 = vmatprep.subr.bf16.mxu1 %v5048_v46 }
 0x94e   :  { %v2469_v44 = vmul.f32 %v3298_v37, %v2460_v42  ;;  %v3265_v37 = vld [vmem:[%s4915_s6] sm:$0xff]  }
 0x94f   :  { %1775 = vadd.xlane.f32.xlu1 %v1774_v26  ;;  %3243 = vrot.lane.b32.xlu0 %v3242_v38, %s3358_s12  ;;  %v3266_v38 = vld [vmem:[%s4915_s6 + $0x8] sm:$0xff]  }
 0x950   :  { %v3247_v36 = vpack.i.bf16 %v2469_v44, %v2468_v17  ;;  %3198 = vmatpush3.bf16.msra.mxu1 %v3264_v3  ;;  %3204 = vmatpush3.bf16.msra.mxu0 %v3265_v37 }
 0x951   :  { %3211 = vmatprep.subr.bf16.mxu1 %v5048_v46  ;;  %3205 = vmatprep.subr.bf16.mxu0 %v5048_v46 }
 0x954   :  { %3206 = vmatpush3.bf16.msra.mxu0 %v3266_v38 }
 0x960   :  { %3248 = vrot.lane.b32.xlu1 %v3247_v36, %s3359_s2 }
 0x9c2   :  { %v2604_v47 = vpop.xlane.xlu0 %2603 }
 0x9c3   :  { %3299 = vrcp.f32 %v2604_v47  ;;  %v3034_v47 = vld [vmem:[%s4914_s5] ss:$0 sm:$0xff] }
 0x9c6   :  { %v1773_v22 = vpop.xlane.xlu0 %1772 }
 0x9ca   :  { %v3244_v40 = vpop.permute.xlu0 %3243 }
 0x9cb   :  { %v3246_v10 = vunpack.i.h.bf16 %v3244_v40  ;;  %v3245_v8 = vunpack.i.l.bf16 %v3244_v40 }
 0x9cd   :  { %v3300_v56 = vpop.eup %3299 }
 0x9d8   :  { %v2607_v2 = vpop.xlane.xlu1 %2606 }
 0x9d9   :  { %3301 = vrcp.f32 %v2607_v2 }
 0x9dc   :  { %v1776_v27 = vpop.xlane.xlu1 %1775 }
 0x9dd   :  { %3303 = vrcp.f32 %v1776_v27 }
 0x9de   :  { %3305 = vrcp.f32 %v1773_v22  ;;  %v5061_v22 = vcombine.high %v4411_v63, %v4400_v7 }
 0x9e0   :  { %v3249_v50 = vpop.permute.xlu1 %3248 }
 0x9e1   :  { %v3250_v31 = vunpack.i.l.bf16 %v3249_v50  ;;  %v3251_v48 = vunpack.i.h.bf16 %v3249_v50 }
 0x9e3   :  { %v3302_v33 = vpop.eup %3301 }
 0x9e7   :  { %v3304_v28 = vpop.eup %3303 }
 0x9e8   :  { %v3306_v9 = vpop.eup %3305  ;;  %v1937_v18 = vmul.f32 %v3304_v28, %v4709_v32 }
 0x9e9   :  { %v1936_v0 = vmul.f32 %v3306_v9, %v4705_v4 }
 0x9ea   :  { %v2725_v12 = vsel %vm1470_vm11, %v1937_v18, %v3246_v10 }
 0x9eb   :  { %v2724_v15 = vsel %vm1470_vm11, %v1936_v0, %v3245_v8  ;;  %v2727_v49 = vsel %vm1473_vm9, %v2725_v12, %v3251_v48 }
 0x9ec   :  { %v2726_v51 = vsel %vm1473_vm9, %v2724_v15, %v3250_v31 }
 0xa09   :  { %v2647_v34 = vpop.f32.mrb[28].mxu1 }
 0xa0a   :  { %v3187_v41 = vpop.f32.mrb[29].mxu1  ;;  %v2698_v58 = vmul.f32 %v3300_v56, %v2647_v34 }
 0xa0b   :  { %v2650_v13 = vpop.f32.mrb[30].mxu1 }
 0xa0c   :  { %v3188_v20 = vpop.f32.mrb[31].mxu1 }
 0xa1f   :  { %v2690_v45 = vpop.f32.mrb[32].mxu0 }
 0xa20   :  { %v2699_v5 = vmul.f32 %v3302_v33, %v2690_v45  ;;  %v3193_v39 = vpop.f32.mrb[33].mxu0  ;;  %v3267_v45 = vld [vmem:[%s4916_s7] sm:$0xff]  }
 0xa21   :  { %v2693_v42 = vpop.f32.mrb[34].mxu0  ;;  %v3270_v39 = vld [vmem:[%s4916_s7 + $0x18] sm:$0xff]  }
 0xa22   :  { %v3252_v35 = vpack.i.bf16 %v2699_v5, %v2698_v58  ;;  %v3194_v23 = vpop.f32.mrb[35].mxu0  ;;  %v3268_v58 = vld [vmem:[%s4916_s7 + $0x8] sm:$0xff]   ;;  %v3269_v5 = vld [vmem:[%s4916_s7 + $0x10] sm:$0xff]  }
 0xa24   :  { %3253 = vrot.lane.b32.xlu1 %v3252_v35, %s3360_s1 }
 0xa96   :  { %v3254_v24 = vpop.permute.xlu1 %3253 }
 0xa97   :  { %v3256_v59 = vunpack.i.h.bf16 %v3254_v24  ;;  %v3255_v1 = vunpack.i.l.bf16 %v3254_v24 }
 0xa99   :  { %v2730_v32 = vsel %vm2728_vm14, %v2727_v49, %v3256_v59  ;;  %v2729_v6 = vsel %vm2728_vm14, %v2726_v51, %v3255_v1  ;;  %v5062_v1 = vcombine.low %v4411_v63, %v4400_v7 }
 0xa9a   :  { %v2731_v60 = vpack.c.bf16 %v2730_v32, %v2729_v6 }
 0xa9c   :  { %3200 = vmatmul.mubr.msk.bf16.vlgmr.msra.gmra.mrb[32].mxu1 %vm44_vm0, %v2731_v60 }
 0xa9d   :  { %3219 = vmatprep.mubr.msk.bf16.mxu1 %vm3346_vm1, %v5048_v46  ;;  %3212 = vmatpush3.bf16.msra.mxu1 %v3267_v45 }
 0xa9e   :  { %3213 = vmatprep.subr.bf16.mxu1 %v5048_v46 }
 0xaa1   :  { %3214 = vmatpush3.bf16.msra.mxu1 %v3268_v58 }
 0xaa2   :  { %3215 = vmatprep.subr.bf16.mxu1 %v5048_v46 }
 0xaa5   :  { %3216 = vmatpush3.bf16.msra.mxu1 %v3269_v5 }
 0xaa6   :  { %3217 = vmatprep.subr.bf16.mxu1 %v5048_v46 }
 0xaa9   :  { %3218 = vmatpush3.bf16.msra.mxu1 %v3270_v39 }
 0xb6f   :  { %v2785_v4 = vpop.f32.mrb[32].mxu1 }
 0xb70   :  { %v4827_v29 = vadd.f32 %v3319_v62, %v2785_v4  ;;  %v3201_v30 = vpop.f32.mrb[33].mxu1 }
 0xb71   :  { %v2788_v54 = vpop.f32.mrb[34].mxu1 }
 0xb72   :  { %v4832_v16 = vadd.f32 %v3320_v25, %v2788_v54  ;;  %v3202_v57 = vpop.f32.mrb[35].mxu1  ;;  %v2794_v53 = vmul.f32 %v4827_v29, %v4827_v29 }
 0xb74   :  { %v2796_v61 = vsel %vm44_vm0, %v2794_v53, 0.0  ;;  %v2795_v19 = vmul.f32 %v4832_v16, %v4832_v16 }
 0xb75   :  { %2797 = vadd.xlane.f32.xlu0 %v2796_v61 }
 0xb76   :  { %v2799_v52 = vsel %vm44_vm0, %v2795_v19, 0.0 }
 0xb77   :  { %2800 = vadd.xlane.f32.xlu1 %v2799_v52 }
 0xc02   :  { %v2798_v26 = vpop.xlane.xlu0 %2797 }
 0xc03   :  { %v2802_v17 = vmul.f32 0.03125, %v2798_v26 }
 0xc04   :  { %v2801_v44 = vpop.xlane.xlu1 %2800 }
 0xc05   :  { %v2804_v36 = vadd.f32 1e-06, %v2802_v17  ;;  %v2803_v43 = vmul.f32 0.03125, %v2801_v44 }
 0xc07   :  { %3307 = vrsqrt.f32 %v2804_v36  ;;  %v2805_v34 = vadd.f32 1e-06, %v2803_v43 }
 0xc09   :  { %3309 = vrsqrt.f32 %v2805_v34 }
 0xc11   :  { %v3308_v41 = vpop.eup %3307 }
 0xc12   :  { %v2808_v13 = vmul.f32 %v3308_v41, %v4827_v29 }
 0xc13   :  { %v3310_v20 = vpop.eup %3309 }
 0xc14   :  { %v2809_v2 = vmul.f32 %v3310_v20, %v4832_v16  ;;  %v2817_v3 = vmul.f32 %v3034_v47, %v2808_v13 }
 0xc16   :  { %v2818_v56 = vmul.f32 %v3034_v47, %v2809_v2 }
 0xc18   :  { %v2819_v33 = vpack.c.bf16 %v2818_v56, %v2817_v3 }
 0xc1a   :  { %3208 = vmatmul.mubr.msk.bf16.vlgmr.msra.gmra.mrb[36].mxu0 %vm44_vm0, %v2819_v33 }
 0xced   :  { %v2873_v42 = vpop.f32.mrb[36].mxu0 }
 0xcee   :  { %2896 = vrot.lane.b32.xlu0 %v2873_v42, %s3361_s26  ;;  %v3209_v35 = vpop.f32.mrb[37].mxu0  ;;  %v3038_v46 = vmul.f32 -1.442695, %v2873_v42 }
 0xcef   :  { %v2876_v23 = vpop.f32.mrb[38].mxu0 }
 0xcf0   :  { %2898 = vrot.lane.b32.xlu1 %v2876_v23, %s3361_s26  ;;  %v3210_v27 = vpop.f32.mrb[39].mxu0  ;;  %v3039_v28 = vmul.f32 -1.442695, %v2876_v23  ;;  %3311 = vpow2.f32 %v3038_v46 }
 0xcf2   :  { %1464 = vrot.lane.b32.xlu0 %v5061_v22, %s3358_s12  ;;  %3313 = vpow2.f32 %v3039_v28 }
 0xcf4   :  { %1466 = vrot.lane.b32.xlu1 %v1461_v21, %s3358_s12 }
 0xcfa   :  { %v3312_v9 = vpop.eup %3311 }
 0xcfb   :  { %v2886_v18 = vadd.f32 1.0, %v3312_v9 }
 0xcfc   :  { %v3314_v40 = vpop.eup %3313 }
 0xcfd   :  { %v2887_v50 = vadd.f32 1.0, %v3314_v40  ;;  %3315 = vrcp.f32 %v2886_v18 }
 0xcff   :  { %3317 = vrcp.f32 %v2887_v50 }
 0xd07   :  { %v3316_v0 = vpop.eup %3315 }
 0xd08   :  { %v2892_v8 = vmul.f32 %v3316_v0, %v2873_v42 }
 0xd09   :  { %v3318_v10 = vpop.eup %3317 }
 0xd0a   :  { %v2893_v12 = vmul.f32 %v3318_v10, %v2876_v23 }
 0xd60   :  { %v2897_v31 = vpop.permute.xlu0 %2896 }
 0xd61   :  { %v2902_v24 = vmul.f32 %v2897_v31, %v2892_v8 }
 0xd62   :  { %v2899_v48 = vpop.permute.xlu1 %2898 }
 0xd63   :  { %v2903_v15 = vmul.f32 %v2899_v48, %v2893_v12 }
 0xd64   :  { %v1465_v59 = vpop.permute.xlu0 %1464 }
 0xd65   :  { %v2904_v21 = vpack.c.bf16 %v2903_v15, %v2902_v24  ;;  %v1471_v49 = vsel %vm1470_vm11, %v5062_v1, %v1465_v59 }
 0xd66   :  { %1474 = vst.msk [vmem:[%s4920_s11] sm:$0xff] %vm1473_vm9, %v1471_v49  ;;  %v1467_v51 = vpop.permute.xlu1 %1466 }
 0xd67   :  { %v1472_v32 = vsel %vm1470_vm11, %v1460_v55, %v1467_v51  ;;  %3220 = vmatmul.mubr.msk.bf16.vlgmr.msra.gmra.mrb[36].mxu1 %vm2937_vm15, %v2904_v21 }
 0xd68   :  { %1475 = vst.msk [vmem:[%s4920_s11 + $0x8] sm:$0xff] %vm1473_vm9, %v1472_v32 }
 0xe3a   :  { %v2975_v7 = vpop.f32.mrb[36].mxu1 }
 0xe3b   :  { %v2982_v63 = vadd.f32 %v2975_v7, %v4827_v29  ;;  %v3221_v6 = vpop.f32.mrb[37].mxu1 }
 0xe3c   :  { %v2978_v60 = vpop.f32.mrb[38].mxu1 }
 0xe3d   :  { %2984 = vst.msk [vmem:[#allocation2] sm:$0xff] %vm44_vm0, %v2982_v63  ;;  %v2983_v4 = vadd.f32 %v2978_v60, %v4832_v16  ;;  %v3222_v14 = vpop.f32.mrb[39].mxu1 }
 0xe3f   :  { %2985 = vst.msk [vmem:[#allocation2 + $0x8] sm:$0xff] %vm44_vm0, %v2983_v4 }
 0xe40   :  { %3332 = shalt.err (!%p3329_p4)
}
 0xe41   :  { %s3333_s1 = scalar_lea.hbm %s4919_s10, 256 }
 0xe42   :  { %p3334_p5 = scmp.ne.s32.totalorder %s4919_s10, %s3333_s1  ;;  %p3337_p6 = scmp.lt.u32.totalorder %s3333_s1, %s4919_s10 }
 0xe44   :  { %p3339_p7 = pnand %p3337_p6, %p3334_p5 }
 0xe46   :  { %3342 = shalt.err (!%p3339_p7)
}
 0xe47   :  { %s3363_s17 = smov 128  }
 0xe48   :  { %2997 = dma.vmem_to_hbm [thread:$0]  %s2992_s30, 256, %s4919_s10, [#allocation3], %s3363_s17, %s3363_s17, %s3358_s12  }
 0xe49   :  { %3343 = dma.done.wait [#allocation3], 256  }
 0xe4a   :  { %3344 = vsyncadd [#allocation3], 4294967040 }
 0xe4b   :  { %3009 = vsyncpa [#allocation3], 1 }

</bundles_post_ra>
